<compile_context>
chip_gen: v5e
topology: v5e:2x2
jax: 0.10.0
libtpu: 0.0.40
codegen_flags: <defaults>
</compile_context>

<pallas_src>
import functools

import jax
import jax.numpy as jnp
from jax.experimental import pallas as pl
from jax.experimental.pallas import tpu as pltpu

# ---- model hyperparameters (stand-ins for HAND_LENGTH / HIDDEN_SIZE / ...) ----
HAND_LENGTH = 16      # input_size
HIDDEN_SIZE = 32      # hidden_size
NUM_LAYERS = 2        # num_layers
NUM_CLASSES = 4       # num_classes

TB = 8                # batch tile (sublane-aligned); grid axis = batch tiles


# --------------------------------------------------------------------------
# Fused Pallas kernel: stacked LSTM over time + MLP head, all VMEM-resident.
# --------------------------------------------------------------------------
def _fused_lstm_classifier_kernel(x_ref, wx0_ref, wh0_ref, b0_ref, *refs,
                                  num_layers, seq_len, hidden, tb):
    """Ref layout (all whole-array VMEM blocks for the current batch tile):
         x_ref                  (T*TB, D)   time-major flattened input, bf16
         wx0_ref/wh0_ref/b0_ref layer-0 weights (bf16) + combined bias (f32)
         refs[0 .. 2(L-1)-1]    per upper layer l: W_l=[wx;wh] (2H,4H) bf16,
                                                   b_l (1,4H) f32
         refs[2(L-1) .. +3]     fc1_w (H,32) bf16, fc1_b (1,32) f32,
                                fc2_w (32,C) bf16, fc2_b (1,C) f32
         refs[2(L-1)+4]         out (TB, C) f32
    """
    n_up = 2 * (num_layers - 1)
    layer_refs = refs[:n_up]
    fc1w_ref, fc1b_ref, fc2w_ref, fc2b_ref = refs[n_up:n_up + 4]
    out_ref = refs[n_up + 4]

    H = hidden
    G = 4 * H

    # ---- Layer-0 input projections for ALL timesteps: one MXU push,
    #      bias folded in (removes 8 per-step matmuls + 8 bias broadcasts).
    xproj0 = (jnp.dot(x_ref[...], wx0_ref[...],
                      preferred_element_type=jnp.float32)
              + b0_ref[...])                               # (T*TB, 4H) f32

    wh0 = wh0_ref[...]                                     # (H, 4H) bf16

    # ---- Upper layers: fused [wx; wh] weights, bias broadcast hoisted once.
    Ws, biases = [], []
    for l in range(num_layers - 1):
        Ws.append(layer_refs[2 * l][...])                  # (2H, 4H) bf16
        biases.append(jnp.broadcast_to(layer_refs[2 * l + 1][...], (tb, G)))

    def gates_to_hc(gates, c_prev):
        # PyTorch gate order: i, f, g, o.  Whole-tile sigmoid/tanh (2 EUP passes).
        sig = jax.nn.sigmoid(gates)
        tng = jnp.tanh(gates)
        i_g = sig[:, 0 * H:1 * H]
        f_g = sig[:, 1 * H:2 * H]
        g_g = tng[:, 2 * H:3 * H]
        o_g = sig[:, 3 * H:4 * H]
        c_new = f_g * c_prev + i_g * g_g
        h_new = o_g * jnp.tanh(c_new)
        return h_new, c_new

    h = [jnp.zeros((tb, H), jnp.float32) for _ in range(num_layers)]
    c = [jnp.zeros((tb, H), jnp.float32) for _ in range(num_layers)]

    # ---- Fully unrolled time loop (T small & static); layer wavefront kept.
    for t in range(seq_len):
        xp_t = xproj0[t * tb:(t + 1) * tb, :]              # aligned (TB, 4H) slice
        if t == 0:
            g0 = xp_t                                      # h0 == 0: skip matmul
        else:
            g0 = (jnp.dot(h[0].astype(jnp.bfloat16), wh0,
                          preferred_element_type=jnp.float32) + xp_t)
        h[0], c[0] = gates_to_hc(g0, c[0])
        inp = h[0]
        for l in range(1, num_layers):
            # One fused MXU push per cell: [x_t ; h_{t-1}] @ [wx ; wh].
            cat = jnp.concatenate([inp, h[l]], axis=-1).astype(jnp.bfloat16)
            gl = (jnp.dot(cat, Ws[l - 1],
                          preferred_element_type=jnp.float32) + biases[l - 1])
            h[l], c[l] = gates_to_hc(gl, c[l])
            inp = h[l]

    # ---- MLP head on the last hidden state of the top layer (out[:, -1, :]).
    z = (jnp.dot(h[-1].astype(jnp.bfloat16), fc1w_ref[...],
                 preferred_element_type=jnp.float32) + fc1b_ref[...])
    z = jnp.maximum(z, 0.0)
    logits = (jnp.dot(z.astype(jnp.bfloat16), fc2w_ref[...],
                      preferred_element_type=jnp.float32) + fc2b_ref[...])
    out_ref[...] = logits.astype(out_ref.dtype)


# --------------------------------------------------------------------------
# Wrapper
# --------------------------------------------------------------------------
@jax.jit
def lstm_classifier_forward(x_btd, params):
    """x_btd: (B, T, D) batch_first, like the PyTorch module. Returns (B, C)."""
    B, T, D = x_btd.shape
    H = params["lstm"][0]["wh"].shape[0]
    C = params["w2"].shape[1]
    L = len(params["lstm"])

    nbt = -(-B // TB)                 # ceil(B / TB) batch tiles
    B_pad = nbt * TB

    # Pad batch to a sublane-aligned tile, then lay out time-major per tile so
    # every timestep slice is a contiguous (TB, D) block: (nbt, T*TB, D).
    x_pad = jnp.zeros((B_pad, T, D), jnp.float32).at[:B].set(x_btd)
    x_tiles = (x_pad.reshape(nbt, TB, T, D)
                    .transpose(0, 2, 1, 3)
                    .reshape(nbt, T * TB, D)
                    .astype(jnp.bfloat16))

    l0 = params["lstm"][0]
    flat_inputs = [x_tiles,
                   l0["wx"].astype(jnp.bfloat16),        # (D, 4H)
                   l0["wh"].astype(jnp.bfloat16),        # (H, 4H)
                   l0["b"]]                              # (1, 4H) f32
    for layer in params["lstm"][1:]:
        flat_inputs.append(jnp.concatenate([layer["wx"], layer["wh"]],
                                           axis=0).astype(jnp.bfloat16))  # (2H,4H)
        flat_inputs.append(layer["b"])                   # (1, 4H) f32
    flat_inputs += [params["w1"].astype(jnp.bfloat16), params["b1"],
                    params["w2"].astype(jnp.bfloat16), params["b2"]]

    in_specs = [pl.BlockSpec((None, T * TB, D), lambda i: (i, 0, 0))]
    for a in flat_inputs[1:]:
        in_specs.append(pl.BlockSpec(a.shape, lambda i: (0, 0)))

    out = pl.pallas_call(
        functools.partial(_fused_lstm_classifier_kernel,
                          num_layers=L, seq_len=T, hidden=H, tb=TB),
        grid=(nbt,),
        in_specs=in_specs,
        out_specs=pl.BlockSpec((TB, C), lambda i: (i, 0)),
        out_shape=jax.ShapeDtypeStruct((B_pad, C), jnp.float32),
        compiler_params=pltpu.CompilerParams(
            dimension_semantics=("parallel",)),   # 2x on v7x once B scales
    )(*flat_inputs)
    return out[:B]


def init_params(key, input_size, hidden_size, num_layers, num_classes):
    """Deterministic PyTorch-style uniform(-1/sqrt(H), 1/sqrt(H)) init."""
    k = 1.0 / jnp.sqrt(hidden_size)
    params = {"lstm": []}
    for layer in range(num_layers):
        d_in = input_size if layer == 0 else hidden_size
        key, k1, k2, k3, k4 = jax.random.split(key, 5)
        w_ih = jax.random.uniform(k1, (4 * hidden_size, d_in), jnp.float32, -k, k)
        w_hh = jax.random.uniform(k2, (4 * hidden_size, hidden_size), jnp.float32, -k, k)
        b_ih = jax.random.uniform(k3, (4 * hidden_size,), jnp.float32, -k, k)
        b_hh = jax.random.uniform(k4, (4 * hidden_size,), jnp.float32, -k, k)
        params["lstm"].append({
            "wx": w_ih.T,                          # (D, 4H)
            "wh": w_hh.T,                          # (H, 4H)
            "b": (b_ih + b_hh)[None, :],           # (1, 4H)
        })
    key, k1, k2, k3, k4 = jax.random.split(key, 5)
    kf1 = 1.0 / jnp.sqrt(hidden_size)
    kf2 = 1.0 / jnp.sqrt(32.0)
    params["w1"] = jax.random.uniform(k1, (hidden_size, 32), jnp.float32, -kf1, kf1)
    params["b1"] = jax.random.uniform(k2, (1, 32), jnp.float32, -kf1, kf1)
    params["w2"] = jax.random.uniform(k3, (32, num_classes), jnp.float32, -kf2, kf2)
    params["b2"] = jax.random.uniform(k4, (1, num_classes), jnp.float32, -kf2, kf2)
    return params


def _reference_forward(x_btd, params):
    """Pure-JAX fp32 reference of the PyTorch forward (validation only)."""
    hp = jax.lax.Precision.HIGHEST
    B, T, _ = x_btd.shape
    H = params["lstm"][0]["wh"].shape[0]
    out = x_btd
    for layer in params["lstm"]:
        wx, wh, b = layer["wx"], layer["wh"], layer["b"]
        h = jnp.zeros((B, H), jnp.float32)
        c = jnp.zeros((B, H), jnp.float32)
        hs = []
        for t in range(T):
            gates = (jnp.dot(out[:, t, :], wx, precision=hp)
                     + jnp.dot(h, wh, precision=hp) + b)
            i = jax.nn.sigmoid(gates[:, 0 * H:1 * H])
            f = jax.nn.sigmoid(gates[:, 1 * H:2 * H])
            g = jnp.tanh(gates[:, 2 * H:3 * H])
            o = jax.nn.sigmoid(gates[:, 3 * H:4 * H])
            c = f * c + i * g
            h = o * jnp.tanh(c)
            hs.append(h)
        out = jnp.stack(hs, axis=1)
    z = jnp.maximum(jnp.dot(out[:, -1, :], params["w1"], precision=hp)
                    + params["b1"], 0.0)
    return jnp.dot(z, params["w2"], precision=hp) + params["b2"]


if __name__ == "__main__":
    B, T = 2, 8
    key = jax.random.PRNGKey(0)
    k_x, k_p = jax.random.split(key)
    x = jax.random.normal(k_x, (B, T, HAND_LENGTH), jnp.float32)
    params = init_params(k_p, HAND_LENGTH, HIDDEN_SIZE, NUM_LAYERS, NUM_CLASSES)

    logits = lstm_classifier_forward(x, params)
    jax.block_until_ready(logits)
    assert logits.shape == (B, NUM_CLASSES)

    ref = _reference_forward(x, params)
    max_err = float(jnp.max(jnp.abs(logits - ref)))
    # bf16 MXU operands (f32 accumulate) compound through the T=8 recurrence;
    # 2e-2 is comfortably above that while still catching real bugs.
    assert jnp.allclose(logits, ref, atol=2e-2, rtol=2e-2), f"max|diff|={max_err}"
    print("KERNEL_OK")
</pallas_src>

<mosaic_0001>
module attributes {stable_mosaic.version = 11 : i64} {
  func.func @_fused_lstm_classifier_kernel(%arg0: i32, %arg1: memref<1x64x16xbf16, #tpu.memory_space<vmem>>, %arg2: memref<16x128xbf16, #tpu.memory_space<vmem>>, %arg3: memref<32x128xbf16, #tpu.memory_space<vmem>>, %arg4: memref<1x128xf32, #tpu.memory_space<vmem>>, %arg5: memref<64x128xbf16, #tpu.memory_space<vmem>>, %arg6: memref<1x128xf32, #tpu.memory_space<vmem>>, %arg7: memref<32x32xbf16, #tpu.memory_space<vmem>>, %arg8: memref<1x32xf32, #tpu.memory_space<vmem>>, %arg9: memref<32x4xbf16, #tpu.memory_space<vmem>>, %arg10: memref<1x4xf32, #tpu.memory_space<vmem>>, %arg11: memref<8x4xf32, #tpu.memory_space<vmem>>) attributes {dimension_semantics = [#tpu.dimension_semantics<parallel>], iteration_bounds = array<i64: 1>, scalar_prefetch = 0 : i64, scratch_operands = 0 : i64, tpu.core_type = #tpu.core_type<tc>, window_params = [{transform_indices = @transform_0, window_bounds = array<i64: 1, 64, 16>}, {pipeline_mode = #tpu.pipeline_mode<synchronous>, transform_indices = @transform_1, window_bounds = array<i64: 16, 128>}, {pipeline_mode = #tpu.pipeline_mode<synchronous>, transform_indices = @transform_2, window_bounds = array<i64: 32, 128>}, {pipeline_mode = #tpu.pipeline_mode<synchronous>, transform_indices = @transform_3, window_bounds = array<i64: 1, 128>}, {pipeline_mode = #tpu.pipeline_mode<synchronous>, transform_indices = @transform_4, window_bounds = array<i64: 64, 128>}, {pipeline_mode = #tpu.pipeline_mode<synchronous>, transform_indices = @transform_5, window_bounds = array<i64: 1, 128>}, {pipeline_mode = #tpu.pipeline_mode<synchronous>, transform_indices = @transform_6, window_bounds = array<i64: 32, 32>}, {pipeline_mode = #tpu.pipeline_mode<synchronous>, transform_indices = @transform_7, window_bounds = array<i64: 1, 32>}, {pipeline_mode = #tpu.pipeline_mode<synchronous>, transform_indices = @transform_8, window_bounds = array<i64: 32, 4>}, {pipeline_mode = #tpu.pipeline_mode<synchronous>, transform_indices = @transform_9, window_bounds = array<i64: 1, 4>}, {transform_indices = @transform_10, window_bounds = array<i64: 8, 4>}]} {
    %c0 = arith.constant 0 : index
    %c0_0 = arith.constant 0 : index
    %c0_1 = arith.constant 0 : index
    %0 = vector.load %arg1[%c0, %c0_0, %c0_1] : memref<1x64x16xbf16, #tpu.memory_space<vmem>>, vector<1x64x16xbf16>
    %1 = vector.shape_cast %0 : vector<1x64x16xbf16> to vector<64x16xbf16>
    %c0_2 = arith.constant 0 : index
    %c0_3 = arith.constant 0 : index
    %2 = vector.load %arg2[%c0_2, %c0_3] : memref<16x128xbf16, #tpu.memory_space<vmem>>, vector<16x128xbf16>
    %cst = arith.constant dense<0.000000e+00> : vector<64x128xf32>
    %3 = tpu.matmul %1, %2, %cst {dimension_numbers = #tpu.dot_dimension_numbers<[1], [0], [0], [1], [0, 0, 1, 1], [], []>} : vector<64x16xbf16>, vector<16x128xbf16>, vector<64x128xf32> -> vector<64x128xf32>
    %c0_4 = arith.constant 0 : index
    %c0_5 = arith.constant 0 : index
    %4 = vector.load %arg4[%c0_4, %c0_5] : memref<1x128xf32, #tpu.memory_space<vmem>>, vector<1x128xf32>
    %5 = vector.broadcast %4 : vector<1x128xf32> to vector<64x128xf32>
    %6 = arith.addf %3, %5 : vector<64x128xf32>
    %c0_6 = arith.constant 0 : index
    %c0_7 = arith.constant 0 : index
    %7 = vector.load %arg3[%c0_6, %c0_7] : memref<32x128xbf16, #tpu.memory_space<vmem>>, vector<32x128xbf16>
    %c0_8 = arith.constant 0 : index
    %c0_9 = arith.constant 0 : index
    %8 = vector.load %arg5[%c0_8, %c0_9] : memref<64x128xbf16, #tpu.memory_space<vmem>>, vector<64x128xbf16>
    %c0_10 = arith.constant 0 : index
    %c0_11 = arith.constant 0 : index
    %9 = vector.load %arg6[%c0_10, %c0_11] : memref<1x128xf32, #tpu.memory_space<vmem>>, vector<1x128xf32>
    %10 = vector.shape_cast %9 : vector<1x128xf32> to vector<1x128xf32>
    %11 = vector.broadcast %10 : vector<1x128xf32> to vector<8x128xf32>
    %cst_12 = arith.constant 0.000000e+00 : f32
    %12 = vector.broadcast %cst_12 : f32 to vector<8x32xf32>
    %cst_13 = arith.constant 0.000000e+00 : f32
    %13 = vector.broadcast %cst_13 : f32 to vector<8x32xf32>
    %cst_14 = arith.constant 0.000000e+00 : f32
    %14 = vector.broadcast %cst_14 : f32 to vector<8x32xf32>
    %15 = vector.extract_strided_slice %6 {offsets = [0, 0], sizes = [8, 128], strides = [1, 1]} : vector<64x128xf32> to vector<8x128xf32>
    %16 = arith.negf %15 : vector<8x128xf32>
    %17 = math.exp %16 : vector<8x128xf32>
    %cst_15 = arith.constant 1.000000e+00 : f32
    %18 = vector.broadcast %cst_15 : f32 to vector<8x128xf32>
    %19 = arith.addf %18, %17 : vector<8x128xf32>
    %20 = arith.divf %18, %19 : vector<8x128xf32>
    %21 = math.tanh %15 : vector<8x128xf32>
    %22 = vector.extract_strided_slice %20 {offsets = [0, 0], sizes = [8, 32], strides = [1, 1]} : vector<8x128xf32> to vector<8x32xf32>
    %23 = vector.extract_strided_slice %20 {offsets = [0, 32], sizes = [8, 32], strides = [1, 1]} : vector<8x128xf32> to vector<8x32xf32>
    %24 = vector.extract_strided_slice %21 {offsets = [0, 64], sizes = [8, 32], strides = [1, 1]} : vector<8x128xf32> to vector<8x32xf32>
    %25 = vector.extract_strided_slice %20 {offsets = [0, 96], sizes = [8, 32], strides = [1, 1]} : vector<8x128xf32> to vector<8x32xf32>
    %26 = arith.mulf %23, %13 : vector<8x32xf32>
    %27 = arith.mulf %22, %24 : vector<8x32xf32>
    %28 = arith.addf %26, %27 : vector<8x32xf32>
    %29 = math.tanh %28 : vector<8x32xf32>
    %30 = arith.mulf %25, %29 : vector<8x32xf32>
    %31 = tpu.concatenate %30, %12 in 1 : vector<8x32xf32>, vector<8x32xf32> -> vector<8x64xf32>
    %32 = arith.truncf %31 : vector<8x64xf32> to vector<8x64xbf16>
    %cst_16 = arith.constant dense<0.000000e+00> : vector<8x128xf32>
    %33 = tpu.matmul %32, %8, %cst_16 {dimension_numbers = #tpu.dot_dimension_numbers<[1], [0], [0], [1], [0, 0, 1, 1], [], []>} : vector<8x64xbf16>, vector<64x128xbf16>, vector<8x128xf32> -> vector<8x128xf32>
    %34 = arith.addf %33, %11 : vector<8x128xf32>
    %35 = arith.negf %34 : vector<8x128xf32>
    %36 = math.exp %35 : vector<8x128xf32>
    %cst_17 = arith.constant 1.000000e+00 : f32
    %37 = vector.broadcast %cst_17 : f32 to vector<8x128xf32>
    %38 = arith.addf %37, %36 : vector<8x128xf32>
    %39 = arith.divf %37, %38 : vector<8x128xf32>
    %40 = math.tanh %34 : vector<8x128xf32>
    %41 = vector.extract_strided_slice %39 {offsets = [0, 0], sizes = [8, 32], strides = [1, 1]} : vector<8x128xf32> to vector<8x32xf32>
    %42 = vector.extract_strided_slice %39 {offsets = [0, 32], sizes = [8, 32], strides = [1, 1]} : vector<8x128xf32> to vector<8x32xf32>
    %43 = vector.extract_strided_slice %40 {offsets = [0, 64], sizes = [8, 32], strides = [1, 1]} : vector<8x128xf32> to vector<8x32xf32>
    %44 = vector.extract_strided_slice %39 {offsets = [0, 96], sizes = [8, 32], strides = [1, 1]} : vector<8x128xf32> to vector<8x32xf32>
    %45 = arith.mulf %42, %14 : vector<8x32xf32>
    %46 = arith.mulf %41, %43 : vector<8x32xf32>
    %47 = arith.addf %45, %46 : vector<8x32xf32>
    %48 = math.tanh %47 : vector<8x32xf32>
    %49 = arith.mulf %44, %48 : vector<8x32xf32>
    %50 = vector.extract_strided_slice %6 {offsets = [8, 0], sizes = [8, 128], strides = [1, 1]} : vector<64x128xf32> to vector<8x128xf32>
    %51 = arith.truncf %30 : vector<8x32xf32> to vector<8x32xbf16>
    %cst_18 = arith.constant dense<0.000000e+00> : vector<8x128xf32>
    %52 = tpu.matmul %51, %7, %cst_18 {dimension_numbers = #tpu.dot_dimension_numbers<[1], [0], [0], [1], [0, 0, 1, 1], [], []>} : vector<8x32xbf16>, vector<32x128xbf16>, vector<8x128xf32> -> vector<8x128xf32>
    %53 = arith.addf %52, %50 : vector<8x128xf32>
    %54 = arith.negf %53 : vector<8x128xf32>
    %55 = math.exp %54 : vector<8x128xf32>
    %cst_19 = arith.constant 1.000000e+00 : f32
    %56 = vector.broadcast %cst_19 : f32 to vector<8x128xf32>
    %57 = arith.addf %56, %55 : vector<8x128xf32>
    %58 = arith.divf %56, %57 : vector<8x128xf32>
    %59 = math.tanh %53 : vector<8x128xf32>
    %60 = vector.extract_strided_slice %58 {offsets = [0, 0], sizes = [8, 32], strides = [1, 1]} : vector<8x128xf32> to vector<8x32xf32>
    %61 = vector.extract_strided_slice %58 {offsets = [0, 32], sizes = [8, 32], strides = [1, 1]} : vector<8x128xf32> to vector<8x32xf32>
    %62 = vector.extract_strided_slice %59 {offsets = [0, 64], sizes = [8, 32], strides = [1, 1]} : vector<8x128xf32> to vector<8x32xf32>
    %63 = vector.extract_strided_slice %58 {offsets = [0, 96], sizes = [8, 32], strides = [1, 1]} : vector<8x128xf32> to vector<8x32xf32>
    %64 = arith.mulf %61, %28 : vector<8x32xf32>
    %65 = arith.mulf %60, %62 : vector<8x32xf32>
    %66 = arith.addf %64, %65 : vector<8x32xf32>
    %67 = math.tanh %66 : vector<8x32xf32>
    %68 = arith.mulf %63, %67 : vector<8x32xf32>
    %69 = tpu.concatenate %68, %49 in 1 : vector<8x32xf32>, vector<8x32xf32> -> vector<8x64xf32>
    %70 = arith.truncf %69 : vector<8x64xf32> to vector<8x64xbf16>
    %cst_20 = arith.constant dense<0.000000e+00> : vector<8x128xf32>
    %71 = tpu.matmul %70, %8, %cst_20 {dimension_numbers = #tpu.dot_dimension_numbers<[1], [0], [0], [1], [0, 0, 1, 1], [], []>} : vector<8x64xbf16>, vector<64x128xbf16>, vector<8x128xf32> -> vector<8x128xf32>
    %72 = arith.addf %71, %11 : vector<8x128xf32>
    %73 = arith.negf %72 : vector<8x128xf32>
    %74 = math.exp %73 : vector<8x128xf32>
    %cst_21 = arith.constant 1.000000e+00 : f32
    %75 = vector.broadcast %cst_21 : f32 to vector<8x128xf32>
    %76 = arith.addf %75, %74 : vector<8x128xf32>
    %77 = arith.divf %75, %76 : vector<8x128xf32>
    %78 = math.tanh %72 : vector<8x128xf32>
    %79 = vector.extract_strided_slice %77 {offsets = [0, 0], sizes = [8, 32], strides = [1, 1]} : vector<8x128xf32> to vector<8x32xf32>
    %80 = vector.extract_strided_slice %77 {offsets = [0, 32], sizes = [8, 32], strides = [1, 1]} : vector<8x128xf32> to vector<8x32xf32>
    %81 = vector.extract_strided_slice %78 {offsets = [0, 64], sizes = [8, 32], strides = [1, 1]} : vector<8x128xf32> to vector<8x32xf32>
    %82 = vector.extract_strided_slice %77 {offsets = [0, 96], sizes = [8, 32], strides = [1, 1]} : vector<8x128xf32> to vector<8x32xf32>
    %83 = arith.mulf %80, %47 : vector<8x32xf32>
    %84 = arith.mulf %79, %81 : vector<8x32xf32>
    %85 = arith.addf %83, %84 : vector<8x32xf32>
    %86 = math.tanh %85 : vector<8x32xf32>
    %87 = arith.mulf %82, %86 : vector<8x32xf32>
    %88 = vector.extract_strided_slice %6 {offsets = [16, 0], sizes = [8, 128], strides = [1, 1]} : vector<64x128xf32> to vector<8x128xf32>
    %89 = arith.truncf %68 : vector<8x32xf32> to vector<8x32xbf16>
    %cst_22 = arith.constant dense<0.000000e+00> : vector<8x128xf32>
    %90 = tpu.matmul %89, %7, %cst_22 {dimension_numbers = #tpu.dot_dimension_numbers<[1], [0], [0], [1], [0, 0, 1, 1], [], []>} : vector<8x32xbf16>, vector<32x128xbf16>, vector<8x128xf32> -> vector<8x128xf32>
    %91 = arith.addf %90, %88 : vector<8x128xf32>
    %92 = arith.negf %91 : vector<8x128xf32>
    %93 = math.exp %92 : vector<8x128xf32>
    %cst_23 = arith.constant 1.000000e+00 : f32
    %94 = vector.broadcast %cst_23 : f32 to vector<8x128xf32>
    %95 = arith.addf %94, %93 : vector<8x128xf32>
    %96 = arith.divf %94, %95 : vector<8x128xf32>
    %97 = math.tanh %91 : vector<8x128xf32>
    %98 = vector.extract_strided_slice %96 {offsets = [0, 0], sizes = [8, 32], strides = [1, 1]} : vector<8x128xf32> to vector<8x32xf32>
    %99 = vector.extract_strided_slice %96 {offsets = [0, 32], sizes = [8, 32], strides = [1, 1]} : vector<8x128xf32> to vector<8x32xf32>
    %100 = vector.extract_strided_slice %97 {offsets = [0, 64], sizes = [8, 32], strides = [1, 1]} : vector<8x128xf32> to vector<8x32xf32>
    %101 = vector.extract_strided_slice %96 {offsets = [0, 96], sizes = [8, 32], strides = [1, 1]} : vector<8x128xf32> to vector<8x32xf32>
    %102 = arith.mulf %99, %66 : vector<8x32xf32>
    %103 = arith.mulf %98, %100 : vector<8x32xf32>
    %104 = arith.addf %102, %103 : vector<8x32xf32>
    %105 = math.tanh %104 : vector<8x32xf32>
    %106 = arith.mulf %101, %105 : vector<8x32xf32>
    %107 = tpu.concatenate %106, %87 in 1 : vector<8x32xf32>, vector<8x32xf32> -> vector<8x64xf32>
    %108 = arith.truncf %107 : vector<8x64xf32> to vector<8x64xbf16>
    %cst_24 = arith.constant dense<0.000000e+00> : vector<8x128xf32>
    %109 = tpu.matmul %108, %8, %cst_24 {dimension_numbers = #tpu.dot_dimension_numbers<[1], [0], [0], [1], [0, 0, 1, 1], [], []>} : vector<8x64xbf16>, vector<64x128xbf16>, vector<8x128xf32> -> vector<8x128xf32>
    %110 = arith.addf %109, %11 : vector<8x128xf32>
    %111 = arith.negf %110 : vector<8x128xf32>
    %112 = math.exp %111 : vector<8x128xf32>
    %cst_25 = arith.constant 1.000000e+00 : f32
    %113 = vector.broadcast %cst_25 : f32 to vector<8x128xf32>
    %114 = arith.addf %113, %112 : vector<8x128xf32>
    %115 = arith.divf %113, %114 : vector<8x128xf32>
    %116 = math.tanh %110 : vector<8x128xf32>
    %117 = vector.extract_strided_slice %115 {offsets = [0, 0], sizes = [8, 32], strides = [1, 1]} : vector<8x128xf32> to vector<8x32xf32>
    %118 = vector.extract_strided_slice %115 {offsets = [0, 32], sizes = [8, 32], strides = [1, 1]} : vector<8x128xf32> to vector<8x32xf32>
    %119 = vector.extract_strided_slice %116 {offsets = [0, 64], sizes = [8, 32], strides = [1, 1]} : vector<8x128xf32> to vector<8x32xf32>
    %120 = vector.extract_strided_slice %115 {offsets = [0, 96], sizes = [8, 32], strides = [1, 1]} : vector<8x128xf32> to vector<8x32xf32>
    %121 = arith.mulf %118, %85 : vector<8x32xf32>
    %122 = arith.mulf %117, %119 : vector<8x32xf32>
    %123 = arith.addf %121, %122 : vector<8x32xf32>
    %124 = math.tanh %123 : vector<8x32xf32>
    %125 = arith.mulf %120, %124 : vector<8x32xf32>
    %126 = vector.extract_strided_slice %6 {offsets = [24, 0], sizes = [8, 128], strides = [1, 1]} : vector<64x128xf32> to vector<8x128xf32>
    %127 = arith.truncf %106 : vector<8x32xf32> to vector<8x32xbf16>
    %cst_26 = arith.constant dense<0.000000e+00> : vector<8x128xf32>
    %128 = tpu.matmul %127, %7, %cst_26 {dimension_numbers = #tpu.dot_dimension_numbers<[1], [0], [0], [1], [0, 0, 1, 1], [], []>} : vector<8x32xbf16>, vector<32x128xbf16>, vector<8x128xf32> -> vector<8x128xf32>
    %129 = arith.addf %128, %126 : vector<8x128xf32>
    %130 = arith.negf %129 : vector<8x128xf32>
    %131 = math.exp %130 : vector<8x128xf32>
    %cst_27 = arith.constant 1.000000e+00 : f32
    %132 = vector.broadcast %cst_27 : f32 to vector<8x128xf32>
    %133 = arith.addf %132, %131 : vector<8x128xf32>
    %134 = arith.divf %132, %133 : vector<8x128xf32>
    %135 = math.tanh %129 : vector<8x128xf32>
    %136 = vector.extract_strided_slice %134 {offsets = [0, 0], sizes = [8, 32], strides = [1, 1]} : vector<8x128xf32> to vector<8x32xf32>
    %137 = vector.extract_strided_slice %134 {offsets = [0, 32], sizes = [8, 32], strides = [1, 1]} : vector<8x128xf32> to vector<8x32xf32>
    %138 = vector.extract_strided_slice %135 {offsets = [0, 64], sizes = [8, 32], strides = [1, 1]} : vector<8x128xf32> to vector<8x32xf32>
    %139 = vector.extract_strided_slice %134 {offsets = [0, 96], sizes = [8, 32], strides = [1, 1]} : vector<8x128xf32> to vector<8x32xf32>
    %140 = arith.mulf %137, %104 : vector<8x32xf32>
    %141 = arith.mulf %136, %138 : vector<8x32xf32>
    %142 = arith.addf %140, %141 : vector<8x32xf32>
    %143 = math.tanh %142 : vector<8x32xf32>
    %144 = arith.mulf %139, %143 : vector<8x32xf32>
    %145 = tpu.concatenate %144, %125 in 1 : vector<8x32xf32>, vector<8x32xf32> -> vector<8x64xf32>
    %146 = arith.truncf %145 : vector<8x64xf32> to vector<8x64xbf16>
    %cst_28 = arith.constant dense<0.000000e+00> : vector<8x128xf32>
    %147 = tpu.matmul %146, %8, %cst_28 {dimension_numbers = #tpu.dot_dimension_numbers<[1], [0], [0], [1], [0, 0, 1, 1], [], []>} : vector<8x64xbf16>, vector<64x128xbf16>, vector<8x128xf32> -> vector<8x128xf32>
    %148 = arith.addf %147, %11 : vector<8x128xf32>
    %149 = arith.negf %148 : vector<8x128xf32>
    %150 = math.exp %149 : vector<8x128xf32>
    %cst_29 = arith.constant 1.000000e+00 : f32
    %151 = vector.broadcast %cst_29 : f32 to vector<8x128xf32>
    %152 = arith.addf %151, %150 : vector<8x128xf32>
    %153 = arith.divf %151, %152 : vector<8x128xf32>
    %154 = math.tanh %148 : vector<8x128xf32>
    %155 = vector.extract_strided_slice %153 {offsets = [0, 0], sizes = [8, 32], strides = [1, 1]} : vector<8x128xf32> to vector<8x32xf32>
    %156 = vector.extract_strided_slice %153 {offsets = [0, 32], sizes = [8, 32], strides = [1, 1]} : vector<8x128xf32> to vector<8x32xf32>
    %157 = vector.extract_strided_slice %154 {offsets = [0, 64], sizes = [8, 32], strides = [1, 1]} : vector<8x128xf32> to vector<8x32xf32>
    %158 = vector.extract_strided_slice %153 {offsets = [0, 96], sizes = [8, 32], strides = [1, 1]} : vector<8x128xf32> to vector<8x32xf32>
    %159 = arith.mulf %156, %123 : vector<8x32xf32>
    %160 = arith.mulf %155, %157 : vector<8x32xf32>
    %161 = arith.addf %159, %160 : vector<8x32xf32>
    %162 = math.tanh %161 : vector<8x32xf32>
    %163 = arith.mulf %158, %162 : vector<8x32xf32>
    %164 = vector.extract_strided_slice %6 {offsets = [32, 0], sizes = [8, 128], strides = [1, 1]} : vector<64x128xf32> to vector<8x128xf32>
    %165 = arith.truncf %144 : vector<8x32xf32> to vector<8x32xbf16>
    %cst_30 = arith.constant dense<0.000000e+00> : vector<8x128xf32>
    %166 = tpu.matmul %165, %7, %cst_30 {dimension_numbers = #tpu.dot_dimension_numbers<[1], [0], [0], [1], [0, 0, 1, 1], [], []>} : vector<8x32xbf16>, vector<32x128xbf16>, vector<8x128xf32> -> vector<8x128xf32>
    %167 = arith.addf %166, %164 : vector<8x128xf32>
    %168 = arith.negf %167 : vector<8x128xf32>
    %169 = math.exp %168 : vector<8x128xf32>
    %cst_31 = arith.constant 1.000000e+00 : f32
    %170 = vector.broadcast %cst_31 : f32 to vector<8x128xf32>
    %171 = arith.addf %170, %169 : vector<8x128xf32>
    %172 = arith.divf %170, %171 : vector<8x128xf32>
    %173 = math.tanh %167 : vector<8x128xf32>
    %174 = vector.extract_strided_slice %172 {offsets = [0, 0], sizes = [8, 32], strides = [1, 1]} : vector<8x128xf32> to vector<8x32xf32>
    %175 = vector.extract_strided_slice %172 {offsets = [0, 32], sizes = [8, 32], strides = [1, 1]} : vector<8x128xf32> to vector<8x32xf32>
    %176 = vector.extract_strided_slice %173 {offsets = [0, 64], sizes = [8, 32], strides = [1, 1]} : vector<8x128xf32> to vector<8x32xf32>
    %177 = vector.extract_strided_slice %172 {offsets = [0, 96], sizes = [8, 32], strides = [1, 1]} : vector<8x128xf32> to vector<8x32xf32>
    %178 = arith.mulf %175, %142 : vector<8x32xf32>
    %179 = arith.mulf %174, %176 : vector<8x32xf32>
    %180 = arith.addf %178, %179 : vector<8x32xf32>
    %181 = math.tanh %180 : vector<8x32xf32>
    %182 = arith.mulf %177, %181 : vector<8x32xf32>
    %183 = tpu.concatenate %182, %163 in 1 : vector<8x32xf32>, vector<8x32xf32> -> vector<8x64xf32>
    %184 = arith.truncf %183 : vector<8x64xf32> to vector<8x64xbf16>
    %cst_32 = arith.constant dense<0.000000e+00> : vector<8x128xf32>
    %185 = tpu.matmul %184, %8, %cst_32 {dimension_numbers = #tpu.dot_dimension_numbers<[1], [0], [0], [1], [0, 0, 1, 1], [], []>} : vector<8x64xbf16>, vector<64x128xbf16>, vector<8x128xf32> -> vector<8x128xf32>
    %186 = arith.addf %185, %11 : vector<8x128xf32>
    %187 = arith.negf %186 : vector<8x128xf32>
    %188 = math.exp %187 : vector<8x128xf32>
    %cst_33 = arith.constant 1.000000e+00 : f32
    %189 = vector.broadcast %cst_33 : f32 to vector<8x128xf32>
    %190 = arith.addf %189, %188 : vector<8x128xf32>
    %191 = arith.divf %189, %190 : vector<8x128xf32>
    %192 = math.tanh %186 : vector<8x128xf32>
    %193 = vector.extract_strided_slice %191 {offsets = [0, 0], sizes = [8, 32], strides = [1, 1]} : vector<8x128xf32> to vector<8x32xf32>
    %194 = vector.extract_strided_slice %191 {offsets = [0, 32], sizes = [8, 32], strides = [1, 1]} : vector<8x128xf32> to vector<8x32xf32>
    %195 = vector.extract_strided_slice %192 {offsets = [0, 64], sizes = [8, 32], strides = [1, 1]} : vector<8x128xf32> to vector<8x32xf32>
    %196 = vector.extract_strided_slice %191 {offsets = [0, 96], sizes = [8, 32], strides = [1, 1]} : vector<8x128xf32> to vector<8x32xf32>
    %197 = arith.mulf %194, %161 : vector<8x32xf32>
    %198 = arith.mulf %193, %195 : vector<8x32xf32>
    %199 = arith.addf %197, %198 : vector<8x32xf32>
    %200 = math.tanh %199 : vector<8x32xf32>
    %201 = arith.mulf %196, %200 : vector<8x32xf32>
    %202 = vector.extract_strided_slice %6 {offsets = [40, 0], sizes = [8, 128], strides = [1, 1]} : vector<64x128xf32> to vector<8x128xf32>
    %203 = arith.truncf %182 : vector<8x32xf32> to vector<8x32xbf16>
    %cst_34 = arith.constant dense<0.000000e+00> : vector<8x128xf32>
    %204 = tpu.matmul %203, %7, %cst_34 {dimension_numbers = #tpu.dot_dimension_numbers<[1], [0], [0], [1], [0, 0, 1, 1], [], []>} : vector<8x32xbf16>, vector<32x128xbf16>, vector<8x128xf32> -> vector<8x128xf32>
    %205 = arith.addf %204, %202 : vector<8x128xf32>
    %206 = arith.negf %205 : vector<8x128xf32>
    %207 = math.exp %206 : vector<8x128xf32>
    %cst_35 = arith.constant 1.000000e+00 : f32
    %208 = vector.broadcast %cst_35 : f32 to vector<8x128xf32>
    %209 = arith.addf %208, %207 : vector<8x128xf32>
    %210 = arith.divf %208, %209 : vector<8x128xf32>
    %211 = math.tanh %205 : vector<8x128xf32>
    %212 = vector.extract_strided_slice %210 {offsets = [0, 0], sizes = [8, 32], strides = [1, 1]} : vector<8x128xf32> to vector<8x32xf32>
    %213 = vector.extract_strided_slice %210 {offsets = [0, 32], sizes = [8, 32], strides = [1, 1]} : vector<8x128xf32> to vector<8x32xf32>
    %214 = vector.extract_strided_slice %211 {offsets = [0, 64], sizes = [8, 32], strides = [1, 1]} : vector<8x128xf32> to vector<8x32xf32>
    %215 = vector.extract_strided_slice %210 {offsets = [0, 96], sizes = [8, 32], strides = [1, 1]} : vector<8x128xf32> to vector<8x32xf32>
    %216 = arith.mulf %213, %180 : vector<8x32xf32>
    %217 = arith.mulf %212, %214 : vector<8x32xf32>
    %218 = arith.addf %216, %217 : vector<8x32xf32>
    %219 = math.tanh %218 : vector<8x32xf32>
    %220 = arith.mulf %215, %219 : vector<8x32xf32>
    %221 = tpu.concatenate %220, %201 in 1 : vector<8x32xf32>, vector<8x32xf32> -> vector<8x64xf32>
    %222 = arith.truncf %221 : vector<8x64xf32> to vector<8x64xbf16>
    %cst_36 = arith.constant dense<0.000000e+00> : vector<8x128xf32>
    %223 = tpu.matmul %222, %8, %cst_36 {dimension_numbers = #tpu.dot_dimension_numbers<[1], [0], [0], [1], [0, 0, 1, 1], [], []>} : vector<8x64xbf16>, vector<64x128xbf16>, vector<8x128xf32> -> vector<8x128xf32>
    %224 = arith.addf %223, %11 : vector<8x128xf32>
    %225 = arith.negf %224 : vector<8x128xf32>
    %226 = math.exp %225 : vector<8x128xf32>
    %cst_37 = arith.constant 1.000000e+00 : f32
    %227 = vector.broadcast %cst_37 : f32 to vector<8x128xf32>
    %228 = arith.addf %227, %226 : vector<8x128xf32>
    %229 = arith.divf %227, %228 : vector<8x128xf32>
    %230 = math.tanh %224 : vector<8x128xf32>
    %231 = vector.extract_strided_slice %229 {offsets = [0, 0], sizes = [8, 32], strides = [1, 1]} : vector<8x128xf32> to vector<8x32xf32>
    %232 = vector.extract_strided_slice %229 {offsets = [0, 32], sizes = [8, 32], strides = [1, 1]} : vector<8x128xf32> to vector<8x32xf32>
    %233 = vector.extract_strided_slice %230 {offsets = [0, 64], sizes = [8, 32], strides = [1, 1]} : vector<8x128xf32> to vector<8x32xf32>
    %234 = vector.extract_strided_slice %229 {offsets = [0, 96], sizes = [8, 32], strides = [1, 1]} : vector<8x128xf32> to vector<8x32xf32>
    %235 = arith.mulf %232, %199 : vector<8x32xf32>
    %236 = arith.mulf %231, %233 : vector<8x32xf32>
    %237 = arith.addf %235, %236 : vector<8x32xf32>
    %238 = math.tanh %237 : vector<8x32xf32>
    %239 = arith.mulf %234, %238 : vector<8x32xf32>
    %240 = vector.extract_strided_slice %6 {offsets = [48, 0], sizes = [8, 128], strides = [1, 1]} : vector<64x128xf32> to vector<8x128xf32>
    %241 = arith.truncf %220 : vector<8x32xf32> to vector<8x32xbf16>
    %cst_38 = arith.constant dense<0.000000e+00> : vector<8x128xf32>
    %242 = tpu.matmul %241, %7, %cst_38 {dimension_numbers = #tpu.dot_dimension_numbers<[1], [0], [0], [1], [0, 0, 1, 1], [], []>} : vector<8x32xbf16>, vector<32x128xbf16>, vector<8x128xf32> -> vector<8x128xf32>
    %243 = arith.addf %242, %240 : vector<8x128xf32>
    %244 = arith.negf %243 : vector<8x128xf32>
    %245 = math.exp %244 : vector<8x128xf32>
    %cst_39 = arith.constant 1.000000e+00 : f32
    %246 = vector.broadcast %cst_39 : f32 to vector<8x128xf32>
    %247 = arith.addf %246, %245 : vector<8x128xf32>
    %248 = arith.divf %246, %247 : vector<8x128xf32>
    %249 = math.tanh %243 : vector<8x128xf32>
    %250 = vector.extract_strided_slice %248 {offsets = [0, 0], sizes = [8, 32], strides = [1, 1]} : vector<8x128xf32> to vector<8x32xf32>
    %251 = vector.extract_strided_slice %248 {offsets = [0, 32], sizes = [8, 32], strides = [1, 1]} : vector<8x128xf32> to vector<8x32xf32>
    %252 = vector.extract_strided_slice %249 {offsets = [0, 64], sizes = [8, 32], strides = [1, 1]} : vector<8x128xf32> to vector<8x32xf32>
    %253 = vector.extract_strided_slice %248 {offsets = [0, 96], sizes = [8, 32], strides = [1, 1]} : vector<8x128xf32> to vector<8x32xf32>
    %254 = arith.mulf %251, %218 : vector<8x32xf32>
    %255 = arith.mulf %250, %252 : vector<8x32xf32>
    %256 = arith.addf %254, %255 : vector<8x32xf32>
    %257 = math.tanh %256 : vector<8x32xf32>
    %258 = arith.mulf %253, %257 : vector<8x32xf32>
    %259 = tpu.concatenate %258, %239 in 1 : vector<8x32xf32>, vector<8x32xf32> -> vector<8x64xf32>
    %260 = arith.truncf %259 : vector<8x64xf32> to vector<8x64xbf16>
    %cst_40 = arith.constant dense<0.000000e+00> : vector<8x128xf32>
    %261 = tpu.matmul %260, %8, %cst_40 {dimension_numbers = #tpu.dot_dimension_numbers<[1], [0], [0], [1], [0, 0, 1, 1], [], []>} : vector<8x64xbf16>, vector<64x128xbf16>, vector<8x128xf32> -> vector<8x128xf32>
    %262 = arith.addf %261, %11 : vector<8x128xf32>
    %263 = arith.negf %262 : vector<8x128xf32>
    %264 = math.exp %263 : vector<8x128xf32>
    %cst_41 = arith.constant 1.000000e+00 : f32
    %265 = vector.broadcast %cst_41 : f32 to vector<8x128xf32>
    %266 = arith.addf %265, %264 : vector<8x128xf32>
    %267 = arith.divf %265, %266 : vector<8x128xf32>
    %268 = math.tanh %262 : vector<8x128xf32>
    %269 = vector.extract_strided_slice %267 {offsets = [0, 0], sizes = [8, 32], strides = [1, 1]} : vector<8x128xf32> to vector<8x32xf32>
    %270 = vector.extract_strided_slice %267 {offsets = [0, 32], sizes = [8, 32], strides = [1, 1]} : vector<8x128xf32> to vector<8x32xf32>
    %271 = vector.extract_strided_slice %268 {offsets = [0, 64], sizes = [8, 32], strides = [1, 1]} : vector<8x128xf32> to vector<8x32xf32>
    %272 = vector.extract_strided_slice %267 {offsets = [0, 96], sizes = [8, 32], strides = [1, 1]} : vector<8x128xf32> to vector<8x32xf32>
    %273 = arith.mulf %270, %237 : vector<8x32xf32>
    %274 = arith.mulf %269, %271 : vector<8x32xf32>
    %275 = arith.addf %273, %274 : vector<8x32xf32>
    %276 = math.tanh %275 : vector<8x32xf32>
    %277 = arith.mulf %272, %276 : vector<8x32xf32>
    %278 = vector.extract_strided_slice %6 {offsets = [56, 0], sizes = [8, 128], strides = [1, 1]} : vector<64x128xf32> to vector<8x128xf32>
    %279 = arith.truncf %258 : vector<8x32xf32> to vector<8x32xbf16>
    %cst_42 = arith.constant dense<0.000000e+00> : vector<8x128xf32>
    %280 = tpu.matmul %279, %7, %cst_42 {dimension_numbers = #tpu.dot_dimension_numbers<[1], [0], [0], [1], [0, 0, 1, 1], [], []>} : vector<8x32xbf16>, vector<32x128xbf16>, vector<8x128xf32> -> vector<8x128xf32>
    %281 = arith.addf %280, %278 : vector<8x128xf32>
    %282 = arith.negf %281 : vector<8x128xf32>
    %283 = math.exp %282 : vector<8x128xf32>
    %cst_43 = arith.constant 1.000000e+00 : f32
    %284 = vector.broadcast %cst_43 : f32 to vector<8x128xf32>
    %285 = arith.addf %284, %283 : vector<8x128xf32>
    %286 = arith.divf %284, %285 : vector<8x128xf32>
    %287 = math.tanh %281 : vector<8x128xf32>
    %288 = vector.extract_strided_slice %286 {offsets = [0, 0], sizes = [8, 32], strides = [1, 1]} : vector<8x128xf32> to vector<8x32xf32>
    %289 = vector.extract_strided_slice %286 {offsets = [0, 32], sizes = [8, 32], strides = [1, 1]} : vector<8x128xf32> to vector<8x32xf32>
    %290 = vector.extract_strided_slice %287 {offsets = [0, 64], sizes = [8, 32], strides = [1, 1]} : vector<8x128xf32> to vector<8x32xf32>
    %291 = vector.extract_strided_slice %286 {offsets = [0, 96], sizes = [8, 32], strides = [1, 1]} : vector<8x128xf32> to vector<8x32xf32>
    %292 = arith.mulf %289, %256 : vector<8x32xf32>
    %293 = arith.mulf %288, %290 : vector<8x32xf32>
    %294 = arith.addf %292, %293 : vector<8x32xf32>
    %295 = math.tanh %294 : vector<8x32xf32>
    %296 = arith.mulf %291, %295 : vector<8x32xf32>
    %297 = tpu.concatenate %296, %277 in 1 : vector<8x32xf32>, vector<8x32xf32> -> vector<8x64xf32>
    %298 = arith.truncf %297 : vector<8x64xf32> to vector<8x64xbf16>
    %cst_44 = arith.constant dense<0.000000e+00> : vector<8x128xf32>
    %299 = tpu.matmul %298, %8, %cst_44 {dimension_numbers = #tpu.dot_dimension_numbers<[1], [0], [0], [1], [0, 0, 1, 1], [], []>} : vector<8x64xbf16>, vector<64x128xbf16>, vector<8x128xf32> -> vector<8x128xf32>
    %300 = arith.addf %299, %11 : vector<8x128xf32>
    %301 = arith.negf %300 : vector<8x128xf32>
    %302 = math.exp %301 : vector<8x128xf32>
    %cst_45 = arith.constant 1.000000e+00 : f32
    %303 = vector.broadcast %cst_45 : f32 to vector<8x128xf32>
    %304 = arith.addf %303, %302 : vector<8x128xf32>
    %305 = arith.divf %303, %304 : vector<8x128xf32>
    %306 = math.tanh %300 : vector<8x128xf32>
    %307 = vector.extract_strided_slice %305 {offsets = [0, 0], sizes = [8, 32], strides = [1, 1]} : vector<8x128xf32> to vector<8x32xf32>
    %308 = vector.extract_strided_slice %305 {offsets = [0, 32], sizes = [8, 32], strides = [1, 1]} : vector<8x128xf32> to vector<8x32xf32>
    %309 = vector.extract_strided_slice %306 {offsets = [0, 64], sizes = [8, 32], strides = [1, 1]} : vector<8x128xf32> to vector<8x32xf32>
    %310 = vector.extract_strided_slice %305 {offsets = [0, 96], sizes = [8, 32], strides = [1, 1]} : vector<8x128xf32> to vector<8x32xf32>
    %311 = arith.mulf %308, %275 : vector<8x32xf32>
    %312 = arith.mulf %307, %309 : vector<8x32xf32>
    %313 = arith.addf %311, %312 : vector<8x32xf32>
    %314 = math.tanh %313 : vector<8x32xf32>
    %315 = arith.mulf %310, %314 : vector<8x32xf32>
    %316 = arith.truncf %315 : vector<8x32xf32> to vector<8x32xbf16>
    %c0_46 = arith.constant 0 : index
    %c0_47 = arith.constant 0 : index
    %317 = vector.load %arg7[%c0_46, %c0_47] : memref<32x32xbf16, #tpu.memory_space<vmem>>, vector<32x32xbf16>
    %cst_48 = arith.constant dense<0.000000e+00> : vector<8x32xf32>
    %318 = tpu.matmul %316, %317, %cst_48 {dimension_numbers = #tpu.dot_dimension_numbers<[1], [0], [0], [1], [0, 0, 1, 1], [], []>} : vector<8x32xbf16>, vector<32x32xbf16>, vector<8x32xf32> -> vector<8x32xf32>
    %c0_49 = arith.constant 0 : index
    %c0_50 = arith.constant 0 : index
    %319 = vector.load %arg8[%c0_49, %c0_50] : memref<1x32xf32, #tpu.memory_space<vmem>>, vector<1x32xf32>
    %320 = vector.broadcast %319 : vector<1x32xf32> to vector<8x32xf32>
    %321 = arith.addf %318, %320 : vector<8x32xf32>
    %cst_51 = arith.constant 0.000000e+00 : f32
    %322 = vector.broadcast %cst_51 : f32 to vector<8x32xf32>
    %323 = arith.maximumf %321, %322 : vector<8x32xf32>
    %324 = arith.truncf %323 : vector<8x32xf32> to vector<8x32xbf16>
    %c0_52 = arith.constant 0 : index
    %c0_53 = arith.constant 0 : index
    %325 = vector.load %arg9[%c0_52, %c0_53] : memref<32x4xbf16, #tpu.memory_space<vmem>>, vector<32x4xbf16>
    %cst_54 = arith.constant dense<0.000000e+00> : vector<8x4xf32>
    %326 = tpu.matmul %324, %325, %cst_54 {dimension_numbers = #tpu.dot_dimension_numbers<[1], [0], [0], [1], [0, 0, 1, 1], [], []>} : vector<8x32xbf16>, vector<32x4xbf16>, vector<8x4xf32> -> vector<8x4xf32>
    %c0_55 = arith.constant 0 : index
    %c0_56 = arith.constant 0 : index
    %327 = vector.load %arg10[%c0_55, %c0_56] : memref<1x4xf32, #tpu.memory_space<vmem>>, vector<1x4xf32>
    %328 = vector.broadcast %327 : vector<1x4xf32> to vector<8x4xf32>
    %329 = arith.addf %326, %328 : vector<8x4xf32>
    %c0_57 = arith.constant 0 : index
    %c0_58 = arith.constant 0 : index
    %330 = vector.load %arg11[%c0_57, %c0_58] : memref<8x4xf32, #tpu.memory_space<vmem>>, vector<8x4xf32>
    tpu.vector_store %arg11[%c0_57, %c0_58], %329 {strides = array<i32>} : memref<8x4xf32, #tpu.memory_space<vmem>>, vector<8x4xf32>,
    return
  }
  func.func @transform_0(%arg0: i32) -> (i32, i32, i32) {
    %c0_i32 = arith.constant 0 : i32
    %c0_i32_0 = arith.constant 0 : i32
    %c0_i32_1 = arith.constant 0 : i32
    return %arg0, %c0_i32, %c0_i32_0 : i32, i32, i32
  }
  func.func @transform_1(%arg0: i32) -> (i32, i32) {
    %c0_i32 = arith.constant 0 : i32
    %c0_i32_0 = arith.constant 0 : i32
    %c0_i32_1 = arith.constant 0 : i32
    return %c0_i32, %c0_i32_0 : i32, i32
  }
  func.func @transform_2(%arg0: i32) -> (i32, i32) {
    %c0_i32 = arith.constant 0 : i32
    %c0_i32_0 = arith.constant 0 : i32
    %c0_i32_1 = arith.constant 0 : i32
    return %c0_i32, %c0_i32_0 : i32, i32
  }
  func.func @transform_3(%arg0: i32) -> (i32, i32) {
    %c0_i32 = arith.constant 0 : i32
    %c0_i32_0 = arith.constant 0 : i32
    %c0_i32_1 = arith.constant 0 : i32
    return %c0_i32, %c0_i32_0 : i32, i32
  }
  func.func @transform_4(%arg0: i32) -> (i32, i32) {
    %c0_i32 = arith.constant 0 : i32
    %c0_i32_0 = arith.constant 0 : i32
    %c0_i32_1 = arith.constant 0 : i32
    return %c0_i32, %c0_i32_0 : i32, i32
  }
  func.func @transform_5(%arg0: i32) -> (i32, i32) {
    %c0_i32 = arith.constant 0 : i32
    %c0_i32_0 = arith.constant 0 : i32
    %c0_i32_1 = arith.constant 0 : i32
    return %c0_i32, %c0_i32_0 : i32, i32
  }
  func.func @transform_6(%arg0: i32) -> (i32, i32) {
    %c0_i32 = arith.constant 0 : i32
    %c0_i32_0 = arith.constant 0 : i32
    %c0_i32_1 = arith.constant 0 : i32
    return %c0_i32, %c0_i32_0 : i32, i32
  }
  func.func @transform_7(%arg0: i32) -> (i32, i32) {
    %c0_i32 = arith.constant 0 : i32
    %c0_i32_0 = arith.constant 0 : i32
    %c0_i32_1 = arith.constant 0 : i32
    return %c0_i32, %c0_i32_0 : i32, i32
  }
  func.func @transform_8(%arg0: i32) -> (i32, i32) {
    %c0_i32 = arith.constant 0 : i32
    %c0_i32_0 = arith.constant 0 : i32
    %c0_i32_1 = arith.constant 0 : i32
    return %c0_i32, %c0_i32_0 : i32, i32
  }
  func.func @transform_9(%arg0: i32) -> (i32, i32) {
    %c0_i32 = arith.constant 0 : i32
    %c0_i32_0 = arith.constant 0 : i32
    %c0_i32_1 = arith.constant 0 : i32
    return %c0_i32, %c0_i32_0 : i32, i32
  }
  func.func @transform_10(%arg0: i32) -> (i32, i32) {
    %c0_i32 = arith.constant 0 : i32
    %c0_i32_0 = arith.constant 0 : i32
    return %arg0, %c0_i32 : i32, i32
  }
}

</mosaic_0001>

<bundles_post_ra>
// kernel: lstm_classifier_forward.1
= control target key start
LH: loop header
LB: loop body
LE: loop exit
PB: predicated region body
PF: predicated region fallthrough
CT: control target
= control target key end

     0   :  { %vm76_vm0 = vcmask 130048   ;;  %s1440_s19 = smov 64   ;;  %vm175_vm5 = vcmask 261120   ;;  %vm202_vm6 = vcmask 523264   ;;  %s1797_s1 = inlined_call_operand.vmem [shape: bf16[16,128], index: 1, kind: input, shape index: {}]   ;;  %s1798_s0 = inlined_call_operand.vmem [shape: bf16[1,64,16], index: 0, kind: input, shape index: {}]   ;;  %s1799_s3 = inlined_call_operand.vmem [shape: f32[1,128], index: 3, kind: input, shape index: {}]   ;;  %s1800_s4 = inlined_call_operand.vmem [shape: bf16[64,128], index: 4, kind: input, shape index: {}]   ;;  %s1801_s5 = inlined_call_operand.vmem [shape: f32[1,128], index: 5, kind: input, shape index: {}]   ;;  %s1802_s2 = inlined_call_operand.vmem [shape: bf16[32,128], index: 2, kind: input, shape index: {}]   ;;  %s1803_s6 = inlined_call_operand.vmem [shape: bf16[32,32], index: 6, kind: input, shape index: {}]   ;;  %s1804_s7 = inlined_call_operand.vmem [shape: f32[1,32], index: 7, kind: input, shape index: {}]   ;;  %s1805_s8 = inlined_call_operand.vmem [shape: bf16[32,4], index: 8, kind: input, shape index: {}]   ;;  %s1806_s9 = inlined_call_operand.vmem [shape: f32[1,4], index: 9, kind: input, shape index: {}]   ;;  %s1807_s10 = inlined_call_operand.vmem [shape: f32[8,4], index: 10, kind: output, shape index: {}]  }
   0x1   :  { %v1293_v0 = vld [vmem:[%s1797_s1] sm:$0xff]  ;;  %s1441_s1 = smov 32   ;;  %v1519_v25 = vld [vmem:[%s1800_s4 + $0x18] sm:$0xff]  ;;  %v1525_v26 = vld [vmem:[%s1800_s4 + $0x10] sm:$0xff] }
   0x2   :  { %v1289_v1 = vld [vmem:[%s1798_s0] sm:$0xff]  ;;  %96 = vmatpush.bf16.msra.mxu0 %v1293_v0  ;;  %210 = vmatpush.bf16.msra.mxu1 %v1519_v25  ;;  %v1533_v27 = vld [vmem:[%s1800_s4 + $0x8] sm:$0xff] }
   0x3   :  { %v1507_v2 = vld [vmem:[%s1799_s3] ss:$0 sm:$0xff]  ;;  %342 = vmatpush.bf16.msra.mxu3 %v1519_v25  ;;  %v1554_v32 = vld [vmem:[%s1802_s2 + $0x8] sm:$0xff] }
   0x4   :  { %v1545_v31 = vld [vmem:[%s1800_s4] sm:$0xff]  ;;  %281 = vmatpush.bf16.msra.mxu2 %v1554_v32 }
   0x5   :  { %1212 = vmatmul.msk.bf16.vlgmr.msra.gmra.mxu0 %vm76_vm0, %v1289_v1  ;;  %v1560_v33 = vld [vmem:[%s1802_s2] sm:$0xff] }
   0x6   :  { %942 = vmatpush.bf16.msrb.mxu0 %v1519_v25  ;;  %211 = vmatpush.bf16.msra.mxu1 %v1525_v26  ;;  %v1582_v38 = vld [vmem:[%s1801_s5] ss:$0 sm:$0xff] }
   0x7   :  { %343 = vmatpush.bf16.msra.mxu3 %v1525_v26 }
   0x8   :  { %282 = vmatpush.bf16.msra.mxu2 %v1560_v33 }
   0xa   :  { %943 = vmatpush.bf16.msrb.mxu0 %v1525_v26  ;;  %212 = vmatpush.bf16.msra.mxu1 %v1533_v27 }
   0xb   :  { %344 = vmatpush.bf16.msra.mxu3 %v1533_v27 }
   0xc   :  { %401 = vmatpush.bf16.msrb.mxu2 %v1554_v32 }
   0xe   :  { %944 = vmatpush.bf16.msrb.mxu0 %v1533_v27  ;;  %213 = vmatpush.bf16.msra.mxu1 %v1545_v31 }
   0xf   :  { %345 = vmatpush.bf16.msra.mxu3 %v1545_v31 }
  0x10   :  { %402 = vmatpush.bf16.msrb.mxu2 %v1560_v33 }
  0x12   :  { %462 = vmatpush.bf16.msrb.mxu1 %v1519_v25  ;;  %945 = vmatpush.bf16.msrb.mxu0 %v1545_v31 }
  0x13   :  { %521 = vmatpush.bf16.msrb.mxu3 %v1554_v32 }
  0x16   :  { %463 = vmatpush.bf16.msrb.mxu1 %v1525_v26 }
  0x17   :  { %522 = vmatpush.bf16.msrb.mxu3 %v1560_v33 }
  0x1a   :  { %464 = vmatpush.bf16.msrb.mxu1 %v1533_v27 }
  0x1e   :  { %465 = vmatpush.bf16.msrb.mxu1 %v1545_v31 }
  0x82   :  { %v98_v3 = vpop.f32.mrf.mxu0 }
  0x83   :  { %v99_v4 = vadd.f32 %v1507_v2, %v98_v3 }
  0x85   :  { %1310 = vtanh.f32 %v99_v4  ;;  %v1216_v6 = vmul.f32 -1.442695, %v99_v4 }
  0x87   :  { %1312 = vpow2.f32 %v1216_v6 }
  0x8a   :  { %v100_v43 = vpop.f32.mrf.mxu0 }
  0x8b   :  { %v1311_v5 = vpop.eup %1310  ;;  %v101_v44 = vadd.f32 %v1507_v2, %v100_v43 }
  0x8c   :  { %156 = vrot.lane.b32.xlu0 %v1311_v5, %s1440_s19 }
  0x8d   :  { %v1313_v7 = vpop.eup %1312 }
  0x8e   :  { %v137_v8 = vadd.f32 1.0, %v1313_v7 }
  0x90   :  { %1314 = vrcp.f32 %v137_v8  ;;  %v149_v14 = vand.u32 2147483648, %v137_v8  ;;  %vm143_vm2 = vweird.f32 %v137_v8  ;;  %v147_v15 = vand.u32 2147483647, %v137_v8 }
  0x92   :  { %v150_v17 = vor.u32 1.1754944e-38, %v149_v14  ;;  %vm148_vm4 = vcmp.eq.f32.partialorder %v147_v15, 8.507059e+37 }
  0x96   :  { %v1315_v9 = vpop.eup %1314 }
  0x97   :  { %v139_v10 = vmul.f32 %v1315_v9, %v137_v8  ;;  %vm144_vm1 = vweird.f32 %v1315_v9 }
  0x98   :  { %vm145_vm3 = vmor %vm143_vm2, %vm144_vm1 }
  0x99   :  { %v140_v11 = vsub.f32 1.0, %v139_v10 }
  0x9b   :  { %v141_v12 = vmul.f32 %v1315_v9, %v140_v11 }
  0x9d   :  { %v142_v13 = vadd.f32 %v1315_v9, %v141_v12 }
  0x9f   :  { %v146_v16 = vsel %vm145_vm3, %v1315_v9, %v142_v13 }
  0xa0   :  { %v151_v19 = vsel %vm148_vm4, %v150_v17, %v146_v16 }
  0xa1   :  { %v154_v21 = vmul.f32 0.0, %v151_v19 }
  0xfe   :  { %v157_v18 = vpop.permute.xlu0 %156 }
  0xff   :  { %v159_v20 = vmul.f32 %v157_v18, %v151_v19 }
 0x101   :  { %161 = vrot.lane.b32.xlu0 %v159_v20, %s1441_s1 }
 0x173   :  { %v162_v22 = vpop.permute.xlu0 %161 }
 0x174   :  { %v1512_v23 = vadd.f32 %v162_v22, %v154_v21 }
 0x176   :  { %1316 = vtanh.f32 %v1512_v23 }
 0x17c   :  { %v1317_v24 = vpop.eup %1316 }
 0x17d   :  { %167 = vrot.lane.b32.xlu1 %v1317_v24, %s1440_s19 }
 0x1ef   :  { %v168_v28 = vpop.permute.xlu1 %167 }
 0x1f0   :  { %v170_v29 = vmul.f32 %v168_v28, %v151_v19 }
 0x1f2   :  { %v256_v30 = vpack.c.bf16 %v170_v29, %v170_v29  ;;  %172 = vrot.lane.b32.xlu2 %v170_v29, %s1441_s1 }
 0x1f4   :  { %258 = vrot.lane.b32.xlu1 %v256_v30, %s1441_s1 }
 0x24c   :  { %v173_v34 = vpop.permute.xlu2 %172 }
 0x24d   :  { %v176_v35 = vsel %vm175_vm5, %v173_v34, 0.0 }
 0x24e   :  { %v177_v36 = vpack.c.bf16 %v176_v35, %v176_v35 }
 0x250   :  { %1233 = vmatmul.msk.bf16.vlgmr.msra.gmra.mxu1 %vm202_vm6, %v177_v36 }
 0x251   :  { %641 = vmatpush.bf16.msra.mxu1 %v1554_v32 }
 0x255   :  { %642 = vmatpush.bf16.msra.mxu1 %v1560_v33 }
 0x266   :  { %v259_v37 = vpop.permute.xlu1 %258 }
 0x267   :  { %1243 = vmatmul.msk.bf16.vlgmr.msra.gmra.mxu2 %vm175_vm5, %v259_v37 }
 0x268   :  { %582 = vmatpush.bf16.msra.mxu2 %v1519_v25 }
 0x26c   :  { %583 = vmatpush.bf16.msra.mxu2 %v1525_v26 }
 0x270   :  { %584 = vmatpush.bf16.msra.mxu2 %v1533_v27 }
 0x274   :  { %585 = vmatpush.bf16.msra.mxu2 %v1545_v31 }
 0x2cd   :  { %v215_v39 = vpop.f32.mrf.mxu1 }
 0x2ce   :  { %v216_v40 = vadd.f32 %v1582_v38, %v215_v39 }
 0x2d0   :  { %1318 = vtanh.f32 %v216_v40  ;;  %v1234_v49 = vmul.f32 -1.442695, %v216_v40 }
 0x2d5   :  { %v217_v41 = vpop.f32.mrf.mxu1 }
 0x2d6   :  { %v1319_v42 = vpop.eup %1318 }
 0x2d7   :  { %241 = vrot.lane.b32.xlu0 %v1319_v42, %s1440_s19 }
 0x2ea   :  { %v284_v45 = vpop.f32.mrf.mxu2 }
 0x2eb   :  { %v285_v46 = vadd.f32 %v284_v45, %v101_v44 }
 0x2ed   :  { %1320 = vtanh.f32 %v285_v46  ;;  %v1244_v50 = vmul.f32 -1.442695, %v285_v46 }
 0x2ee   :  { %1322 = vpow2.f32 %v1234_v49 }
 0x2ef   :  { %1324 = vpow2.f32 %v1244_v50 }
 0x2f2   :  { %v286_v47 = vpop.f32.mrf.mxu2 }
 0x2f3   :  { %v1321_v48 = vpop.eup %1320 }
 0x2f4   :  { %310 = vrot.lane.b32.xlu2 %v1321_v48, %s1440_s19  ;;  %v1323_v51 = vpop.eup %1322 }
 0x2f5   :  { %v222_v52 = vadd.f32 1.0, %v1323_v51  ;;  %v1325_v53 = vpop.eup %1324 }
 0x2f6   :  { %v291_v54 = vadd.f32 1.0, %v1325_v53 }
 0x2f7   :  { %1326 = vrcp.f32 %v222_v52  ;;  %v234_v63 = vand.u32 2147483648, %v222_v52  ;;  %vm228_vm8 = vweird.f32 %v222_v52  ;;  %v232_v1 = vand.u32 2147483647, %v222_v52 }
 0x2f8   :  { %1328 = vrcp.f32 %v291_v54  ;;  %v303_v6 = vand.u32 2147483648, %v291_v54  ;;  %vm297_vm12 = vweird.f32 %v291_v54  ;;  %v301_v9 = vand.u32 2147483647, %v291_v54 }
 0x2f9   :  { %v235_v4 = vor.u32 1.1754944e-38, %v234_v63  ;;  %vm233_vm11 = vcmp.eq.f32.partialorder %v232_v1, 8.507059e+37 }
 0x2fa   :  { %v304_v12 = vor.u32 1.1754944e-38, %v303_v6  ;;  %vm302_vm14 = vcmp.eq.f32.partialorder %v301_v9, 8.507059e+37 }
 0x2fd   :  { %v1327_v55 = vpop.eup %1326 }
 0x2fe   :  { %v224_v56 = vmul.f32 %v1327_v55, %v222_v52  ;;  %v1329_v57 = vpop.eup %1328  ;;  %vm229_vm7 = vweird.f32 %v1327_v55 }
 0x2ff   :  { %v293_v59 = vmul.f32 %v1329_v57, %v291_v54  ;;  %vm230_vm9 = vmor %vm228_vm8, %vm229_vm7  ;;  %vm298_vm10 = vweird.f32 %v1329_v57 }
 0x300   :  { %v225_v58 = vsub.f32 1.0, %v224_v56  ;;  %vm299_vm13 = vmor %vm297_vm12, %vm298_vm10 }
 0x301   :  { %v294_v61 = vsub.f32 1.0, %v293_v59 }
 0x302   :  { %v226_v60 = vmul.f32 %v1327_v55, %v225_v58 }
 0x303   :  { %v295_v0 = vmul.f32 %v1329_v57, %v294_v61 }
 0x304   :  { %v227_v62 = vadd.f32 %v1327_v55, %v226_v60 }
 0x305   :  { %v296_v5 = vadd.f32 %v1329_v57, %v295_v0 }
 0x306   :  { %v231_v3 = vsel %vm230_vm9, %v1327_v55, %v227_v62 }
 0x307   :  { %v236_v8 = vsel %vm233_vm11, %v235_v4, %v231_v3  ;;  %v300_v11 = vsel %vm299_vm13, %v1329_v57, %v296_v5 }
 0x308   :  { %v305_v14 = vsel %vm302_vm14, %v304_v12, %v300_v11  ;;  %v239_v16 = vmul.f32 0.0, %v236_v8 }
 0x309   :  { %v308_v20 = vmul.f32 %v305_v14, %v1512_v23  ;;  %v1290_v23 = vld [vmem:[%s1798_s0 + $0x8] sm:$0xff] }
 0x30a   :  { %1213 = vmatmul.msk.bf16.gmra.mxu0 %vm76_vm0, %v1290_v23 }
 0x349   :  { %v242_v7 = vpop.permute.xlu0 %241 }
 0x34a   :  { %v244_v10 = vmul.f32 %v242_v7, %v236_v8 }
 0x34c   :  { %246 = vrot.lane.b32.xlu2 %v244_v10, %s1441_s1 }
 0x34e   :  { %v311_v13 = vpop.permute.xlu2 %310 }
 0x34f   :  { %v313_v15 = vmul.f32 %v311_v13, %v305_v14 }
 0x351   :  { %315 = vrot.lane.b32.xlu1 %v313_v15, %s1441_s1 }
 0x387   :  { %v103_v42 = vpop.f32.mrf.mxu0 }
 0x388   :  { %v104_v43 = vadd.f32 %v1507_v2, %v103_v42 }
 0x3a6   :  { %v247_v17 = vpop.permute.xlu2 %246 }
 0x3a7   :  { %v1590_v18 = vadd.f32 %v247_v17, %v239_v16 }
 0x3a9   :  { %1330 = vtanh.f32 %v1590_v18 }
 0x3af   :  { %v1331_v19 = vpop.eup %1330 }
 0x3b0   :  { %252 = vrot.lane.b32.xlu1 %v1331_v19, %s1440_s19 }
 0x3c3   :  { %v316_v21 = vpop.permute.xlu1 %315 }
 0x3c4   :  { %v1595_v22 = vadd.f32 %v316_v21, %v308_v20 }
 0x3c6   :  { %1332 = vtanh.f32 %v1595_v22 }
 0x3cc   :  { %v1333_v24 = vpop.eup %1332 }
 0x3cd   :  { %321 = vrot.lane.b32.xlu0 %v1333_v24, %s1440_s19 }
 0x422   :  { %v253_v28 = vpop.permute.xlu1 %252 }
 0x423   :  { %v255_v29 = vmul.f32 %v253_v28, %v236_v8 }
 0x425   :  { %330 = vrot.lane.b32.xlu1 %v255_v29, %s1440_s19 }
 0x43f   :  { %v322_v30 = vpop.permute.xlu0 %321 }
 0x440   :  { %v324_v34 = vmul.f32 %v322_v30, %v305_v14 }
 0x442   :  { %v388_v35 = vpack.c.bf16 %v324_v34, %v324_v34  ;;  %326 = vrot.lane.b32.xlu0 %v324_v34, %s1441_s1 }
 0x444   :  { %390 = vrot.lane.b32.xlu2 %v388_v35, %s1441_s1 }
 0x497   :  { %v331_v37 = vpop.permute.xlu1 %330 }
 0x49e   :  { %v391_v36 = vpop.permute.xlu2 %390 }
 0x49f   :  { %1247 = vmatmul.msk.bf16.vlgmr.msrb.gmra.mxu2 %vm175_vm5, %v391_v36 }
 0x4a0   :  { %761 = vmatpush.bf16.msrb.mxu2 %v1554_v32 }
 0x4a4   :  { %762 = vmatpush.bf16.msrb.mxu2 %v1560_v33 }
 0x4b4   :  { %v327_v39 = vpop.permute.xlu0 %326 }
 0x4b5   :  { %v333_v40 = vsel %vm175_vm5, %v327_v39, %v331_v37 }
 0x4b6   :  { %v334_v41 = vpack.c.bf16 %v333_v40, %v333_v40 }
 0x4b8   :  { %1245 = vmatmul.msk.bf16.vlgmr.msra.gmra.mxu3 %vm202_vm6, %v334_v41 }
 0x4b9   :  { %702 = vmatpush.bf16.msra.mxu3 %v1519_v25 }
 0x4bd   :  { %703 = vmatpush.bf16.msra.mxu3 %v1525_v26 }
 0x4c1   :  { %704 = vmatpush.bf16.msra.mxu3 %v1533_v27 }
 0x4c5   :  { %705 = vmatpush.bf16.msra.mxu3 %v1545_v31 }
 0x522   :  { %v404_v44 = vpop.f32.mrf.mxu2 }
 0x523   :  { %v405_v45 = vadd.f32 %v404_v44, %v104_v43  ;;  %v105_v44 = vpop.f32.mrf.mxu0 }
 0x525   :  { %1334 = vtanh.f32 %v405_v45  ;;  %v1248_v52 = vmul.f32 -1.442695, %v405_v45  ;;  %v106_v45 = vadd.f32 %v1507_v2, %v105_v44 }
 0x52a   :  { %v406_v46 = vpop.f32.mrf.mxu2 }
 0x52b   :  { %v1335_v47 = vpop.eup %1334 }
 0x52c   :  { %430 = vrot.lane.b32.xlu2 %v1335_v47, %s1440_s19 }
 0x53b   :  { %v347_v48 = vpop.f32.mrf.mxu3 }
 0x53c   :  { %v348_v49 = vadd.f32 %v1582_v38, %v347_v48 }
 0x53e   :  { %1336 = vtanh.f32 %v348_v49  ;;  %v1246_v4 = vmul.f32 -1.442695, %v348_v49 }
 0x53f   :  { %1338 = vpow2.f32 %v1248_v52 }
 0x543   :  { %v349_v50 = vpop.f32.mrf.mxu3 }
 0x544   :  { %v1337_v51 = vpop.eup %1336 }
 0x545   :  { %373 = vrot.lane.b32.xlu0 %v1337_v51, %s1440_s19  ;;  %v1339_v53 = vpop.eup %1338 }
 0x546   :  { %v411_v54 = vadd.f32 1.0, %v1339_v53 }
 0x548   :  { %1340 = vrcp.f32 %v411_v54  ;;  %v423_v60 = vand.u32 2147483648, %v411_v54  ;;  %vm417_vm1 = vweird.f32 %v411_v54  ;;  %v421_v61 = vand.u32 2147483647, %v411_v54 }
 0x549   :  { %1342 = vpow2.f32 %v1246_v4 }
 0x54a   :  { %v424_v63 = vor.u32 1.1754944e-38, %v423_v60  ;;  %vm422_vm3 = vcmp.eq.f32.partialorder %v421_v61, 8.507059e+37 }
 0x54e   :  { %v1341_v55 = vpop.eup %1340 }
 0x54f   :  { %v413_v56 = vmul.f32 %v1341_v55, %v411_v54  ;;  %vm418_vm15 = vweird.f32 %v1341_v55  ;;  %v1343_v5 = vpop.eup %1342 }
 0x550   :  { %vm419_vm2 = vmor %vm417_vm1, %vm418_vm15  ;;  %v354_v6 = vadd.f32 1.0, %v1343_v5 }
 0x551   :  { %v414_v57 = vsub.f32 1.0, %v413_v56 }
 0x552   :  { %1344 = vrcp.f32 %v354_v6  ;;  %v366_v12 = vand.u32 2147483648, %v354_v6  ;;  %vm360_vm7 = vweird.f32 %v354_v6  ;;  %v364_v13 = vand.u32 2147483647, %v354_v6 }
 0x553   :  { %v415_v58 = vmul.f32 %v1341_v55, %v414_v57 }
 0x554   :  { %v367_v15 = vor.u32 1.1754944e-38, %v366_v12  ;;  %vm365_vm9 = vcmp.eq.f32.partialorder %v364_v13, 8.507059e+37 }
 0x555   :  { %v416_v59 = vadd.f32 %v1341_v55, %v415_v58 }
 0x557   :  { %v420_v62 = vsel %vm419_vm2, %v1341_v55, %v416_v59 }
 0x558   :  { %v425_v1 = vsel %vm422_vm3, %v424_v63, %v420_v62  ;;  %v1345_v7 = vpop.eup %1344 }
 0x559   :  { %v356_v8 = vmul.f32 %v1345_v7, %v354_v6  ;;  %vm361_vm4 = vweird.f32 %v1345_v7  ;;  %v428_v20 = vmul.f32 %v425_v1, %v1595_v22 }
 0x55a   :  { %vm362_vm8 = vmor %vm360_vm7, %vm361_vm4 }
 0x55b   :  { %v357_v9 = vsub.f32 1.0, %v356_v8 }
 0x55d   :  { %v358_v10 = vmul.f32 %v1345_v7, %v357_v9 }
 0x55f   :  { %v359_v11 = vadd.f32 %v1345_v7, %v358_v10 }
 0x561   :  { %v363_v14 = vsel %vm362_vm8, %v1345_v7, %v359_v11 }
 0x562   :  { %v368_v17 = vsel %vm365_vm9, %v367_v15, %v363_v14 }
 0x563   :  { %v371_v29 = vmul.f32 %v368_v17, %v1590_v18 }
 0x586   :  { %v431_v0 = vpop.permute.xlu2 %430 }
 0x587   :  { %v433_v3 = vmul.f32 %v431_v0, %v425_v1 }
 0x589   :  { %435 = vrot.lane.b32.xlu1 %v433_v3, %s1441_s1 }
 0x5b7   :  { %v374_v16 = vpop.permute.xlu0 %373 }
 0x5b8   :  { %v376_v19 = vmul.f32 %v374_v16, %v368_v17 }
 0x5ba   :  { %378 = vrot.lane.b32.xlu2 %v376_v19, %s1441_s1 }
 0x5fb   :  { %v436_v21 = vpop.permute.xlu1 %435 }
 0x5fc   :  { %v1622_v24 = vadd.f32 %v436_v21, %v428_v20 }
 0x5fe   :  { %1346 = vtanh.f32 %v1622_v24 }
 0x604   :  { %v1347_v28 = vpop.eup %1346 }
 0x605   :  { %441 = vrot.lane.b32.xlu0 %v1347_v28, %s1440_s19 }
 0x614   :  { %v379_v30 = vpop.permute.xlu2 %378 }
 0x615   :  { %v1627_v34 = vadd.f32 %v379_v30, %v371_v29 }
 0x617   :  { %1348 = vtanh.f32 %v1627_v34 }
 0x61d   :  { %v1349_v35 = vpop.eup %1348 }
 0x61e   :  { %384 = vrot.lane.b32.xlu1 %v1349_v35, %s1440_s19 }
 0x677   :  { %v442_v23 = vpop.permute.xlu0 %441 }
 0x678   :  { %v444_v22 = vmul.f32 %v442_v23, %v425_v1 }
 0x67a   :  { %v508_v36 = vpack.c.bf16 %v444_v22, %v444_v22  ;;  %446 = vrot.lane.b32.xlu0 %v444_v22, %s1441_s1 }
 0x67c   :  { %510 = vrot.lane.b32.xlu2 %v508_v36, %s1441_s1 }
 0x690   :  { %v385_v37 = vpop.permute.xlu1 %384 }
 0x691   :  { %v387_v39 = vmul.f32 %v385_v37, %v368_v17 }
 0x693   :  { %450 = vrot.lane.b32.xlu1 %v387_v39, %s1440_s19 }
 0x6d6   :  { %v511_v18 = vpop.permute.xlu2 %510 }
 0x6d7   :  { %1251 = vmatmul.msk.bf16.vlgmr.msrb.gmra.mxu3 %vm175_vm5, %v511_v18 }
 0x6d8   :  { %881 = vmatpush.bf16.msrb.mxu3 %v1554_v32 }
 0x6dc   :  { %882 = vmatpush.bf16.msrb.mxu3 %v1560_v33 }
 0x6ec   :  { %v447_v40 = vpop.permute.xlu0 %446 }
 0x705   :  { %v451_v41 = vpop.permute.xlu1 %450 }
 0x706   :  { %v453_v42 = vsel %vm175_vm5, %v447_v40, %v451_v41 }
 0x707   :  { %v454_v43 = vpack.c.bf16 %v453_v42, %v453_v42 }
 0x709   :  { %1249 = vmatmul.msk.bf16.vlgmr.msrb.gmra.mxu1 %vm202_vm6, %v454_v43 }
 0x70a   :  { %822 = vmatpush.bf16.msrb.mxu1 %v1519_v25 }
 0x70e   :  { %823 = vmatpush.bf16.msrb.mxu1 %v1525_v26 }
 0x712   :  { %824 = vmatpush.bf16.msrb.mxu1 %v1533_v27 }
 0x716   :  { %825 = vmatpush.bf16.msrb.mxu1 %v1545_v31 }
 0x75a   :  { %v524_v46 = vpop.f32.mrf.mxu3 }
 0x75b   :  { %v525_v47 = vadd.f32 %v524_v46, %v106_v45 }
 0x75d   :  { %1350 = vtanh.f32 %v525_v47  ;;  %v1252_v54 = vmul.f32 -1.442695, %v525_v47 }
 0x762   :  { %v526_v48 = vpop.f32.mrf.mxu3 }
 0x763   :  { %v1351_v49 = vpop.eup %1350 }
 0x764   :  { %550 = vrot.lane.b32.xlu2 %v1351_v49, %s1440_s19 }
 0x786   :  { %v467_v50 = vpop.f32.mrf.mxu1 }
 0x787   :  { %v468_v51 = vadd.f32 %v1582_v38, %v467_v50 }
 0x789   :  { %1352 = vtanh.f32 %v468_v51  ;;  %v1250_v6 = vmul.f32 -1.442695, %v468_v51 }
 0x78a   :  { %1354 = vpow2.f32 %v1252_v54 }
 0x78e   :  { %v469_v52 = vpop.f32.mrf.mxu1 }
 0x78f   :  { %v1353_v53 = vpop.eup %1352 }
 0x790   :  { %493 = vrot.lane.b32.xlu0 %v1353_v53, %s1440_s19  ;;  %v1355_v55 = vpop.eup %1354 }
 0x791   :  { %v531_v56 = vadd.f32 1.0, %v1355_v55 }
 0x793   :  { %1356 = vrcp.f32 %v531_v56  ;;  %v543_v62 = vand.u32 2147483648, %v531_v56  ;;  %vm537_vm11 = vweird.f32 %v531_v56  ;;  %v541_v63 = vand.u32 2147483647, %v531_v56 }
 0x794   :  { %1358 = vpow2.f32 %v1250_v6 }
 0x795   :  { %v544_v1 = vor.u32 1.1754944e-38, %v543_v62  ;;  %vm542_vm13 = vcmp.eq.f32.partialorder %v541_v63, 8.507059e+37 }
 0x799   :  { %v1357_v57 = vpop.eup %1356 }
 0x79a   :  { %v533_v58 = vmul.f32 %v1357_v57, %v531_v56  ;;  %vm538_vm10 = vweird.f32 %v1357_v57  ;;  %v1359_v7 = vpop.eup %1358 }
 0x79b   :  { %vm539_vm12 = vmor %vm537_vm11, %vm538_vm10  ;;  %v474_v8 = vadd.f32 1.0, %v1359_v7 }
 0x79c   :  { %v534_v59 = vsub.f32 1.0, %v533_v58 }
 0x79d   :  { %1360 = vrcp.f32 %v474_v8  ;;  %v486_v14 = vand.u32 2147483648, %v474_v8  ;;  %vm480_vm15 = vweird.f32 %v474_v8  ;;  %v484_v15 = vand.u32 2147483647, %v474_v8 }
 0x79e   :  { %v535_v60 = vmul.f32 %v1357_v57, %v534_v59 }
 0x79f   :  { %v487_v17 = vor.u32 1.1754944e-38, %v486_v14  ;;  %vm485_vm2 = vcmp.eq.f32.partialorder %v484_v15, 8.507059e+37 }
 0x7a0   :  { %v536_v61 = vadd.f32 %v1357_v57, %v535_v60 }
 0x7a2   :  { %v540_v0 = vsel %vm539_vm12, %v1357_v57, %v536_v61 }
 0x7a3   :  { %v545_v4 = vsel %vm542_vm13, %v544_v1, %v540_v0  ;;  %v1361_v9 = vpop.eup %1360 }
 0x7a4   :  { %v476_v10 = vmul.f32 %v1361_v9, %v474_v8  ;;  %vm481_vm14 = vweird.f32 %v1361_v9  ;;  %v548_v28 = vmul.f32 %v545_v4, %v1622_v24 }
 0x7a5   :  { %vm482_vm1 = vmor %vm480_vm15, %vm481_vm14 }
 0x7a6   :  { %v477_v11 = vsub.f32 1.0, %v476_v10 }
 0x7a8   :  { %v478_v12 = vmul.f32 %v1361_v9, %v477_v11 }
 0x7aa   :  { %v479_v13 = vadd.f32 %v1361_v9, %v478_v12 }
 0x7ac   :  { %v483_v16 = vsel %vm482_vm1, %v1361_v9, %v479_v13 }
 0x7ad   :  { %v488_v20 = vsel %vm485_vm2, %v487_v17, %v483_v16 }
 0x7ae   :  { %v491_v23 = vmul.f32 %v488_v20, %v1627_v34  ;;  %v1291_v34 = vld [vmem:[%s1798_s0 + $0x10] sm:$0xff] }
 0x7af   :  { %1214 = vmatmul.msk.bf16.gmra.mxu0 %vm76_vm0, %v1291_v34 }
 0x7be   :  { %v551_v3 = vpop.permute.xlu2 %550 }
 0x7bf   :  { %v553_v5 = vmul.f32 %v551_v3, %v545_v4 }
 0x7c1   :  { %555 = vrot.lane.b32.xlu1 %v553_v5, %s1441_s1 }
 0x802   :  { %v494_v19 = vpop.permute.xlu0 %493 }
 0x803   :  { %v496_v21 = vmul.f32 %v494_v19, %v488_v20 }
 0x805   :  { %498 = vrot.lane.b32.xlu2 %v496_v21, %s1441_s1 }
 0x82c   :  { %v108_v47 = vpop.f32.mrf.mxu0 }
 0x833   :  { %v556_v29 = vpop.permute.xlu1 %555 }
 0x834   :  { %v1650_v30 = vadd.f32 %v556_v29, %v548_v28 }
 0x836   :  { %1362 = vtanh.f32 %v1650_v30 }
 0x83c   :  { %v1363_v35 = vpop.eup %1362 }
 0x83d   :  { %561 = vrot.lane.b32.xlu0 %v1363_v35, %s1440_s19 }
 0x85f   :  { %v499_v22 = vpop.permute.xlu2 %498 }
 0x860   :  { %v1655_v36 = vadd.f32 %v499_v22, %v491_v23 }
 0x862   :  { %1364 = vtanh.f32 %v1655_v36 }
 0x868   :  { %v1365_v37 = vpop.eup %1364 }
 0x869   :  { %504 = vrot.lane.b32.xlu1 %v1365_v37, %s1440_s19 }
 0x8af   :  { %v562_v39 = vpop.permute.xlu0 %561 }
 0x8b0   :  { %v564_v24 = vmul.f32 %v562_v39, %v545_v4 }
 0x8b2   :  { %v628_v18 = vpack.c.bf16 %v564_v24, %v564_v24  ;;  %566 = vrot.lane.b32.xlu2 %v564_v24, %s1441_s1 }
 0x8b4   :  { %630 = vrot.lane.b32.xlu1 %v628_v18, %s1441_s1 }
 0x8db   :  { %v505_v40 = vpop.permute.xlu1 %504 }
 0x8dc   :  { %v507_v41 = vmul.f32 %v505_v40, %v488_v20 }
 0x8de   :  { %570 = vrot.lane.b32.xlu0 %v507_v41, %s1440_s19 }
 0x90c   :  { %v567_v43 = vpop.permute.xlu2 %566 }
 0x926   :  { %v631_v42 = vpop.permute.xlu1 %630 }
 0x927   :  { %1255 = vmatmul.msk.bf16.vlgmr.msra.gmra.mxu1 %vm175_vm5, %v631_v42 }
 0x928   :  { %1062 = vmatpush.bf16.msra.mxu1 %v1519_v25  ;;  %v109_v25 = vadd.f32 %v1507_v2, %v108_v47 }
 0x92c   :  { %1063 = vmatpush.bf16.msra.mxu1 %v1525_v26 }
 0x930   :  { %1064 = vmatpush.bf16.msra.mxu1 %v1533_v27 }
 0x934   :  { %1065 = vmatpush.bf16.msra.mxu1 %v1545_v31 }
 0x950   :  { %v571_v44 = vpop.permute.xlu0 %570 }
 0x951   :  { %v573_v45 = vsel %vm175_vm5, %v567_v43, %v571_v44  ;;  %v110_v43 = vpop.f32.mrf.mxu0 }
 0x952   :  { %v574_v46 = vpack.c.bf16 %v573_v45, %v573_v45  ;;  %v111_v44 = vadd.f32 %v1507_v2, %v110_v43 }
 0x954   :  { %1253 = vmatmul.msk.bf16.vlgmr.msra.gmra.mxu2 %vm202_vm6, %v574_v46 }
 0x955   :  { %1001 = vmatpush.bf16.msra.mxu2 %v1554_v32 }
 0x959   :  { %1002 = vmatpush.bf16.msra.mxu2 %v1560_v33 }
 0x9a4   :  { %v644_v48 = vpop.f32.mrf.mxu1 }
 0x9a5   :  { %v645_v26 = vadd.f32 %v644_v48, %v109_v25 }
 0x9a7   :  { %1366 = vtanh.f32 %v645_v26  ;;  %v1256_v51 = vmul.f32 -1.442695, %v645_v26 }
 0x9ac   :  { %v646_v27 = vpop.f32.mrf.mxu1 }
 0x9ad   :  { %v1367_v49 = vpop.eup %1366 }
 0x9ae   :  { %670 = vrot.lane.b32.xlu2 %v1367_v49, %s1440_s19 }
 0x9d7   :  { %v587_v31 = vpop.f32.mrf.mxu2 }
 0x9d8   :  { %v588_v50 = vadd.f32 %v1582_v38, %v587_v31 }
 0x9da   :  { %1368 = vtanh.f32 %v588_v50  ;;  %v1254_v3 = vmul.f32 -1.442695, %v588_v50 }
 0x9db   :  { %1370 = vpow2.f32 %v1256_v51 }
 0x9df   :  { %v589_v52 = vpop.f32.mrf.mxu2 }
 0x9e0   :  { %v1369_v32 = vpop.eup %1368 }
 0x9e1   :  { %613 = vrot.lane.b32.xlu0 %v1369_v32, %s1440_s19  ;;  %v1371_v33 = vpop.eup %1370 }
 0x9e2   :  { %v651_v53 = vadd.f32 1.0, %v1371_v33 }
 0x9e4   :  { %1372 = vrcp.f32 %v651_v53  ;;  %v663_v59 = vand.u32 2147483648, %v651_v53  ;;  %vm657_vm4 = vweird.f32 %v651_v53  ;;  %v661_v60 = vand.u32 2147483647, %v651_v53 }
 0x9e5   :  { %1374 = vpow2.f32 %v1254_v3 }
 0x9e6   :  { %v664_v62 = vor.u32 1.1754944e-38, %v663_v59  ;;  %vm662_vm8 = vcmp.eq.f32.partialorder %v661_v60, 8.507059e+37 }
 0x9ea   :  { %v1373_v54 = vpop.eup %1372 }
 0x9eb   :  { %v653_v55 = vmul.f32 %v1373_v54, %v651_v53  ;;  %vm658_vm3 = vweird.f32 %v1373_v54  ;;  %v1375_v4 = vpop.eup %1374 }
 0x9ec   :  { %vm659_vm7 = vmor %vm657_vm4, %vm658_vm3  ;;  %v594_v5 = vadd.f32 1.0, %v1375_v4 }
 0x9ed   :  { %v654_v56 = vsub.f32 1.0, %v653_v55 }
 0x9ee   :  { %1376 = vrcp.f32 %v594_v5  ;;  %v606_v11 = vand.u32 2147483648, %v594_v5  ;;  %vm600_vm10 = vweird.f32 %v594_v5  ;;  %v604_v12 = vand.u32 2147483647, %v594_v5 }
 0x9ef   :  { %v655_v57 = vmul.f32 %v1373_v54, %v654_v56 }
 0x9f0   :  { %v607_v14 = vor.u32 1.1754944e-38, %v606_v11  ;;  %vm605_vm12 = vcmp.eq.f32.partialorder %v604_v12, 8.507059e+37 }
 0x9f1   :  { %v656_v58 = vadd.f32 %v1373_v54, %v655_v57 }
 0x9f3   :  { %v660_v61 = vsel %vm659_vm7, %v1373_v54, %v656_v58 }
 0x9f4   :  { %v665_v0 = vsel %vm662_vm8, %v664_v62, %v660_v61  ;;  %v1377_v6 = vpop.eup %1376 }
 0x9f5   :  { %v596_v7 = vmul.f32 %v1377_v6, %v594_v5  ;;  %vm601_vm9 = vweird.f32 %v1377_v6  ;;  %v668_v19 = vmul.f32 %v665_v0, %v1650_v30 }
 0x9f6   :  { %vm602_vm11 = vmor %vm600_vm10, %vm601_vm9 }
 0x9f7   :  { %v597_v8 = vsub.f32 1.0, %v596_v7 }
 0x9f9   :  { %v598_v9 = vmul.f32 %v1377_v6, %v597_v8 }
 0x9fb   :  { %v599_v10 = vadd.f32 %v1377_v6, %v598_v9 }
 0x9fd   :  { %v603_v13 = vsel %vm602_vm11, %v1377_v6, %v599_v10 }
 0x9fe   :  { %v608_v16 = vsel %vm605_vm12, %v607_v14, %v603_v13 }
 0x9ff   :  { %v611_v29 = vmul.f32 %v608_v16, %v1655_v36 }
 0xa08   :  { %v671_v63 = vpop.permute.xlu2 %670 }
 0xa09   :  { %v673_v1 = vmul.f32 %v671_v63, %v665_v0 }
 0xa0b   :  { %675 = vrot.lane.b32.xlu1 %v673_v1, %s1441_s1 }
 0xa53   :  { %v614_v15 = vpop.permute.xlu0 %613 }
 0xa54   :  { %v616_v17 = vmul.f32 %v614_v15, %v608_v16 }
 0xa56   :  { %618 = vrot.lane.b32.xlu2 %v616_v17, %s1441_s1 }
 0xa7d   :  { %v676_v20 = vpop.permute.xlu1 %675 }
 0xa7e   :  { %v1682_v21 = vadd.f32 %v676_v20, %v668_v19 }
 0xa80   :  { %1378 = vtanh.f32 %v1682_v21 }
 0xa86   :  { %v1379_v28 = vpop.eup %1378 }
 0xa87   :  { %681 = vrot.lane.b32.xlu0 %v1379_v28, %s1440_s19 }
 0xab0   :  { %v619_v35 = vpop.permute.xlu2 %618 }
 0xab1   :  { %v1687_v23 = vadd.f32 %v619_v35, %v611_v29 }
 0xab3   :  { %1380 = vtanh.f32 %v1687_v23 }
 0xab9   :  { %v1381_v22 = vpop.eup %1380 }
 0xaba   :  { %624 = vrot.lane.b32.xlu1 %v1381_v22, %s1440_s19  ;;  %v1292_v22 = vld [vmem:[%s1798_s0 + $0x18] sm:$0xff] }
 0xabb   :  { %1215 = vmatmul.msk.bf16.gmra.mxu0 %vm76_vm0, %v1292_v22 }
 0xaf9   :  { %v682_v37 = vpop.permute.xlu0 %681 }
 0xafa   :  { %v684_v30 = vmul.f32 %v682_v37, %v665_v0 }
 0xafc   :  { %v748_v39 = vpack.c.bf16 %v684_v30, %v684_v30  ;;  %686 = vrot.lane.b32.xlu0 %v684_v30, %s1441_s1 }
 0xafe   :  { %750 = vrot.lane.b32.xlu2 %v748_v39, %s1441_s1 }
 0xb2c   :  { %v625_v24 = vpop.permute.xlu1 %624 }
 0xb2d   :  { %v627_v18 = vmul.f32 %v625_v24, %v608_v16 }
 0xb2f   :  { %690 = vrot.lane.b32.xlu1 %v627_v18, %s1440_s19 }
 0xb58   :  { %v751_v36 = vpop.permute.xlu2 %750 }
 0xb59   :  { %1259 = vmatmul.msk.bf16.vlgmr.msrb.gmra.mxu2 %vm175_vm5, %v751_v36 }
 0xb6e   :  { %v687_v40 = vpop.permute.xlu0 %686 }
 0xba1   :  { %v691_v41 = vpop.permute.xlu1 %690 }
 0xba2   :  { %v693_v34 = vsel %vm175_vm5, %v687_v40, %v691_v41  ;;  %v113_v40 = vpop.f32.mrf.mxu0  ;;  %v1726_v41 = vld [vmem:[%s1799_s3] ss:$0 sm:$0xff] }
 0xba3   :  { %v694_v42 = vpack.c.bf16 %v693_v34, %v693_v34  ;;  %v114_v34 = vadd.f32 %v1726_v41, %v113_v40 }
 0xba5   :  { %1257 = vmatmul.msk.bf16.vlgmr.msra.gmra.mxu3 %vm202_vm6, %v694_v42 }
 0xbdc   :  { %v764_v45 = vpop.f32.mrf.mxu2 }
 0xbdd   :  { %v765_v46 = vadd.f32 %v764_v45, %v111_v44 }
 0xbdf   :  { %1382 = vtanh.f32 %v765_v46  ;;  %v1260_v48 = vmul.f32 -1.442695, %v765_v46 }
 0xbe1   :  { %1384 = vpow2.f32 %v1260_v48 }
 0xbe4   :  { %v766_v47 = vpop.f32.mrf.mxu2 }
 0xbe5   :  { %v1383_v25 = vpop.eup %1382 }
 0xbe6   :  { %790 = vrot.lane.b32.xlu2 %v1383_v25, %s1440_s19 }
 0xbe7   :  { %v1385_v26 = vpop.eup %1384 }
 0xbe8   :  { %v771_v27 = vadd.f32 1.0, %v1385_v26 }
 0xbea   :  { %1386 = vrcp.f32 %v771_v27  ;;  %v783_v54 = vand.u32 2147483648, %v771_v27  ;;  %vm777_vm14 = vweird.f32 %v771_v27  ;;  %v781_v55 = vand.u32 2147483647, %v771_v27 }
 0xbec   :  { %v784_v57 = vor.u32 1.1754944e-38, %v783_v54  ;;  %vm782_vm1 = vcmp.eq.f32.partialorder %v781_v55, 8.507059e+37 }
 0xbf0   :  { %v1387_v50 = vpop.eup %1386 }
 0xbf1   :  { %v773_v51 = vmul.f32 %v1387_v50, %v771_v27  ;;  %vm778_vm13 = vweird.f32 %v1387_v50 }
 0xbf2   :  { %vm779_vm15 = vmor %vm777_vm14, %vm778_vm13 }
 0xbf3   :  { %v774_v32 = vsub.f32 1.0, %v773_v51 }
 0xbf5   :  { %v775_v33 = vmul.f32 %v1387_v50, %v774_v32 }
 0xbf7   :  { %v776_v53 = vadd.f32 %v1387_v50, %v775_v33 }
 0xbf9   :  { %v780_v56 = vsel %vm779_vm15, %v1387_v50, %v776_v53 }
 0xbfa   :  { %v785_v59 = vsel %vm782_vm1, %v784_v57, %v780_v56 }
 0xbfb   :  { %v788_v13 = vmul.f32 %v785_v59, %v1682_v21 }
 0xc28   :  { %v707_v49 = vpop.f32.mrf.mxu3 }
 0xc29   :  { %v708_v31 = vadd.f32 %v1582_v38, %v707_v49 }
 0xc2b   :  { %1388 = vtanh.f32 %v708_v31  ;;  %v1258_v61 = vmul.f32 -1.442695, %v708_v31 }
 0xc2d   :  { %1390 = vpow2.f32 %v1258_v61 }
 0xc30   :  { %v709_v52 = vpop.f32.mrf.mxu3 }
 0xc31   :  { %v1389_v2 = vpop.eup %1388 }
 0xc32   :  { %733 = vrot.lane.b32.xlu0 %v1389_v2, %s1440_s19 }
 0xc33   :  { %v1391_v62 = vpop.eup %1390 }
 0xc34   :  { %v714_v63 = vadd.f32 1.0, %v1391_v62 }
 0xc36   :  { %1392 = vrcp.f32 %v714_v63  ;;  %v726_v6 = vand.u32 2147483648, %v714_v63  ;;  %vm720_vm3 = vweird.f32 %v714_v63  ;;  %v724_v7 = vand.u32 2147483647, %v714_v63 }
 0xc38   :  { %v727_v9 = vor.u32 1.1754944e-38, %v726_v6  ;;  %vm725_vm7 = vcmp.eq.f32.partialorder %v724_v7, 8.507059e+37 }
 0xc3c   :  { %v1393_v0 = vpop.eup %1392 }
 0xc3d   :  { %v716_v1 = vmul.f32 %v1393_v0, %v714_v63  ;;  %vm721_vm2 = vweird.f32 %v1393_v0 }
 0xc3e   :  { %vm722_vm4 = vmor %vm720_vm3, %vm721_vm2 }
 0xc3f   :  { %v717_v3 = vsub.f32 1.0, %v716_v1 }
 0xc40   :  { %v791_v58 = vpop.permute.xlu2 %790 }
 0xc41   :  { %v793_v60 = vmul.f32 %v791_v58, %v785_v59  ;;  %v718_v4 = vmul.f32 %v1393_v0, %v717_v3 }
 0xc43   :  { %795 = vrot.lane.b32.xlu1 %v793_v60, %s1441_s1  ;;  %v719_v5 = vadd.f32 %v1393_v0, %v718_v4 }
 0xc45   :  { %v723_v8 = vsel %vm722_vm4, %v1393_v0, %v719_v5 }
 0xc46   :  { %v728_v11 = vsel %vm725_vm7, %v727_v9, %v723_v8 }
 0xc47   :  { %v731_v17 = vmul.f32 %v728_v11, %v1687_v23 }
 0xca4   :  { %v734_v10 = vpop.permute.xlu0 %733 }
 0xca5   :  { %v736_v12 = vmul.f32 %v734_v10, %v728_v11 }
 0xca7   :  { %738 = vrot.lane.b32.xlu2 %v736_v12, %s1441_s1 }
 0xcb5   :  { %v796_v14 = vpop.permute.xlu1 %795 }
 0xcb6   :  { %v1704_v15 = vadd.f32 %v796_v14, %v788_v13 }
 0xcb8   :  { %1394 = vtanh.f32 %v1704_v15 }
 0xcbe   :  { %v1395_v16 = vpop.eup %1394 }
 0xcbf   :  { %801 = vrot.lane.b32.xlu0 %v1395_v16, %s1440_s19 }
 0xd01   :  { %v739_v19 = vpop.permute.xlu2 %738 }
 0xd02   :  { %v1709_v20 = vadd.f32 %v739_v19, %v731_v17 }
 0xd04   :  { %1396 = vtanh.f32 %v1709_v20 }
 0xd0a   :  { %v1397_v28 = vpop.eup %1396 }
 0xd0b   :  { %744 = vrot.lane.b32.xlu1 %v1397_v28, %s1440_s19 }
 0xd31   :  { %v802_v29 = vpop.permute.xlu0 %801 }
 0xd32   :  { %v804_v21 = vmul.f32 %v802_v29, %v785_v59 }
 0xd34   :  { %v868_v35 = vpack.c.bf16 %v804_v21, %v804_v21  ;;  %806 = vrot.lane.b32.xlu0 %v804_v21, %s1441_s1 }
 0xd36   :  { %870 = vrot.lane.b32.xlu2 %v868_v35, %s1441_s1 }
 0xd7d   :  { %v745_v23 = vpop.permute.xlu1 %744 }
 0xd7e   :  { %v747_v37 = vmul.f32 %v745_v23, %v728_v11 }
 0xd80   :  { %810 = vrot.lane.b32.xlu1 %v747_v37, %s1440_s19 }
 0xd90   :  { %v871_v30 = vpop.permute.xlu2 %870 }
 0xd91   :  { %1263 = vmatmul.msk.bf16.vlgmr.msrb.gmra.mxu3 %vm175_vm5, %v871_v30  ;;  %v115_v30 = vpop.f32.mrf.mxu0 }
 0xda6   :  { %v807_v39 = vpop.permute.xlu0 %806 }
 0xdf2   :  { %v811_v24 = vpop.permute.xlu1 %810 }
 0xdf3   :  { %v813_v18 = vsel %vm175_vm5, %v807_v39, %v811_v24  ;;  %v116_v39 = vadd.f32 %v1726_v41, %v115_v30  ;;  %v1755_v41 = vld [vmem:[%s1801_s5] ss:$0 sm:$0xff] }
 0xdf4   :  { %v814_v36 = vpack.c.bf16 %v813_v18, %v813_v18 }
 0xdf6   :  { %1261 = vmatmul.msk.bf16.vlgmr.msrb.gmra.mxu1 %vm202_vm6, %v814_v36 }
 0xe14   :  { %v884_v42 = vpop.f32.mrf.mxu3 }
 0xe15   :  { %v885_v43 = vadd.f32 %v884_v42, %v114_v34 }
 0xe17   :  { %1398 = vtanh.f32 %v885_v43  ;;  %v1264_v46 = vmul.f32 -1.442695, %v885_v43 }
 0xe19   :  { %1400 = vpow2.f32 %v1264_v46 }
 0xe1c   :  { %v886_v44 = vpop.f32.mrf.mxu3 }
 0xe1d   :  { %v1399_v45 = vpop.eup %1398 }
 0xe1e   :  { %910 = vrot.lane.b32.xlu2 %v1399_v45, %s1440_s19 }
 0xe1f   :  { %v1401_v47 = vpop.eup %1400 }
 0xe20   :  { %v891_v25 = vadd.f32 1.0, %v1401_v47 }
 0xe22   :  { %1402 = vrcp.f32 %v891_v25  ;;  %v903_v50 = vand.u32 2147483648, %v891_v25  ;;  %vm897_vm8 = vweird.f32 %v891_v25  ;;  %v901_v52 = vand.u32 2147483647, %v891_v25 }
 0xe24   :  { %v904_v33 = vor.u32 1.1754944e-38, %v903_v50  ;;  %vm902_vm10 = vcmp.eq.f32.partialorder %v901_v52, 8.507059e+37 }
 0xe28   :  { %v1403_v48 = vpop.eup %1402 }
 0xe29   :  { %v893_v26 = vmul.f32 %v1403_v48, %v891_v25  ;;  %vm898_vm0 = vweird.f32 %v1403_v48 }
 0xe2a   :  { %vm899_vm9 = vmor %vm897_vm8, %vm898_vm0 }
 0xe2b   :  { %v894_v27 = vsub.f32 1.0, %v893_v26 }
 0xe2d   :  { %v895_v49 = vmul.f32 %v1403_v48, %v894_v27 }
 0xe2f   :  { %v896_v31 = vadd.f32 %v1403_v48, %v895_v49 }
 0xe31   :  { %v900_v32 = vsel %vm899_vm9, %v1403_v48, %v896_v31 }
 0xe32   :  { %v905_v54 = vsel %vm902_vm10, %v904_v33, %v900_v32 }
 0xe33   :  { %v908_v4 = vmul.f32 %v905_v54, %v1704_v15 }
 0xe73   :  { %v827_v51 = vpop.f32.mrf.mxu1 }
 0xe74   :  { %v828_v2 = vadd.f32 %v1582_v38, %v827_v51 }
 0xe76   :  { %1404 = vtanh.f32 %v828_v2  ;;  %v1262_v58 = vmul.f32 -1.442695, %v828_v2 }
 0xe78   :  { %v911_v53 = vpop.permute.xlu2 %910  ;;  %1406 = vpow2.f32 %v1262_v58 }
 0xe79   :  { %v913_v55 = vmul.f32 %v911_v53, %v905_v54 }
 0xe7b   :  { %915 = vrot.lane.b32.xlu1 %v913_v55, %s1441_s1  ;;  %v829_v56 = vpop.f32.mrf.mxu1 }
 0xe7c   :  { %v1405_v57 = vpop.eup %1404 }
 0xe7d   :  { %853 = vrot.lane.b32.xlu0 %v1405_v57, %s1440_s19 }
 0xe7e   :  { %v1407_v59 = vpop.eup %1406 }
 0xe7f   :  { %v834_v60 = vadd.f32 1.0, %v1407_v59 }
 0xe81   :  { %1408 = vrcp.f32 %v834_v60  ;;  %v846_v1 = vand.u32 2147483648, %v834_v60  ;;  %vm840_vm12 = vweird.f32 %v834_v60  ;;  %v844_v3 = vand.u32 2147483647, %v834_v60 }
 0xe83   :  { %v847_v7 = vor.u32 1.1754944e-38, %v846_v1  ;;  %vm845_vm14 = vcmp.eq.f32.partialorder %v844_v3, 8.507059e+37 }
 0xe87   :  { %v1409_v38 = vpop.eup %1408 }
 0xe88   :  { %v836_v61 = vmul.f32 %v1409_v38, %v834_v60  ;;  %vm841_vm11 = vweird.f32 %v1409_v38 }
 0xe89   :  { %vm842_vm13 = vmor %vm840_vm12, %vm841_vm11  ;;  %vm1186_vm12 = vcmask 31744  }
 0xe8a   :  { %v837_v62 = vsub.f32 1.0, %v836_v61 }
 0xe8c   :  { %v838_v63 = vmul.f32 %v1409_v38, %v837_v62 }
 0xe8e   :  { %v839_v0 = vadd.f32 %v1409_v38, %v838_v63 }
 0xe90   :  { %v843_v5 = vsel %vm842_vm13, %v1409_v38, %v839_v0 }
 0xe91   :  { %v848_v10 = vsel %vm845_vm14, %v847_v7, %v843_v5 }
 0xe92   :  { %v851_v13 = vmul.f32 %v848_v10, %v1709_v20 }
 0xeed   :  { %v916_v6 = vpop.permute.xlu1 %915 }
 0xeee   :  { %v1734_v8 = vadd.f32 %v916_v6, %v908_v4 }
 0xeef   :  { %v854_v9 = vpop.permute.xlu0 %853 }
 0xef0   :  { %1410 = vtanh.f32 %v1734_v8  ;;  %v856_v11 = vmul.f32 %v854_v9, %v848_v10 }
 0xef2   :  { %858 = vrot.lane.b32.xlu2 %v856_v11, %s1441_s1 }
 0xef6   :  { %v1411_v12 = vpop.eup %1410 }
 0xef7   :  { %921 = vrot.lane.b32.xlu0 %v1411_v12, %s1440_s19 }
 0xf4c   :  { %v859_v14 = vpop.permute.xlu2 %858 }
 0xf4d   :  { %v1740_v15 = vadd.f32 %v859_v14, %v851_v13 }
 0xf4f   :  { %1412 = vtanh.f32 %v1740_v15 }
 0xf55   :  { %v1413_v16 = vpop.eup %1412 }
 0xf56   :  { %864 = vrot.lane.b32.xlu1 %v1413_v16, %s1440_s19 }
 0xf69   :  { %v922_v17 = vpop.permute.xlu0 %921 }
 0xf6a   :  { %v924_v19 = vmul.f32 %v922_v17, %v905_v54 }
 0xf6c   :  { %v988_v28 = vpack.c.bf16 %v924_v19, %v924_v19  ;;  %926 = vrot.lane.b32.xlu0 %v924_v19, %s1441_s1 }
 0xf6e   :  { %990 = vrot.lane.b32.xlu2 %v988_v28, %s1441_s1 }
 0xfc8   :  { %v991_v29 = vpop.permute.xlu2 %990  ;;  %v865_v21 = vpop.permute.xlu1 %864 }
 0xfc9   :  { %v867_v35 = vmul.f32 %v865_v21, %v848_v10  ;;  %1267 = vmatmul.msk.bf16.vlgmr.msra.gmra.mxu2 %vm175_vm5, %v991_v29 }
 0xfcb   :  { %930 = vrot.lane.b32.xlu1 %v867_v35, %s1440_s19 }
 0xfde   :  { %v927_v20 = vpop.permute.xlu0 %926 }
0x103d   :  { %v931_v22 = vpop.permute.xlu1 %930 }
0x103e   :  { %v933_v23 = vsel %vm175_vm5, %v927_v20, %v931_v22 }
0x103f   :  { %v934_v37 = vpack.c.bf16 %v933_v23, %v933_v23 }
0x1041   :  { %1265 = vmatmul.msk.bf16.vlgmr.msrb.gmra.mxu0 %vm202_vm6, %v934_v37 }
0x104c   :  { %v1004_v24 = vpop.f32.mrf.mxu2 }
0x104d   :  { %v1005_v18 = vadd.f32 %v1004_v24, %v116_v39 }
0x104f   :  { %1414 = vtanh.f32 %v1005_v18  ;;  %v1268_v34 = vmul.f32 -1.442695, %v1005_v18 }
0x1051   :  { %1416 = vpow2.f32 %v1268_v34 }
0x1054   :  { %v1006_v36 = vpop.f32.mrf.mxu2 }
0x1055   :  { %v1415_v40 = vpop.eup %1414 }
0x1056   :  { %1030 = vrot.lane.b32.xlu0 %v1415_v40, %s1440_s19 }
0x1057   :  { %v1417_v42 = vpop.eup %1416 }
0x1058   :  { %v1011_v43 = vadd.f32 1.0, %v1417_v42 }
0x105a   :  { %1418 = vrcp.f32 %v1011_v43  ;;  %v1023_v31 = vand.u32 2147483648, %v1011_v43  ;;  %vm1017_vm1 = vweird.f32 %v1011_v43  ;;  %v1021_v50 = vand.u32 2147483647, %v1011_v43 }
0x105c   :  { %v1024_v2 = vor.u32 1.1754944e-38, %v1023_v31  ;;  %vm1022_vm3 = vcmp.eq.f32.partialorder %v1021_v50, 8.507059e+37 }
0x1060   :  { %v1419_v44 = vpop.eup %1418 }
0x1061   :  { %v1013_v45 = vmul.f32 %v1419_v44, %v1011_v43  ;;  %vm1018_vm15 = vweird.f32 %v1419_v44 }
0x1062   :  { %vm1019_vm2 = vmor %vm1017_vm1, %vm1018_vm15 }
0x1063   :  { %v1014_v47 = vsub.f32 1.0, %v1013_v45 }
0x1065   :  { %v1015_v48 = vmul.f32 %v1419_v44, %v1014_v47 }
0x1067   :  { %v1016_v27 = vadd.f32 %v1419_v44, %v1015_v48 }
0x1069   :  { %v1020_v51 = vsel %vm1019_vm2, %v1419_v44, %v1016_v27  ;;  %v1300_v27 = vld [vmem:[%s1803_s6] sm:$0xff] }
0x106a   :  { %v1025_v32 = vsel %vm1022_vm3, %v1024_v2, %v1020_v51  ;;  %v1303_v51 = vld [vmem:[%s1805_s8 + $0x8] sm:$0xff] }
0x106b   :  { %v1028_v4 = vmul.f32 %v1025_v32, %v1734_v8  ;;  %1179 = vmatpush.bf16.msra.mxu0 %v1303_v51 }
0x10be   :  { %v947_v46 = vpop.f32.mrf.mxu0 }
0x10bf   :  { %v948_v25 = vadd.f32 %v1755_v41, %v947_v46 }
0x10c1   :  { %1420 = vtanh.f32 %v948_v25  ;;  %v1266_v53 = vmul.f32 -1.442695, %v948_v25 }
0x10c3   :  { %1422 = vpow2.f32 %v1266_v53 }
0x10c6   :  { %v949_v26 = vpop.f32.mrf.mxu0 }
0x10c7   :  { %v1421_v49 = vpop.eup %1420  ;;  %v1301_v26 = vld [vmem:[%s1803_s6 + $0x8] sm:$0xff] }
0x10c8   :  { %973 = vrot.lane.b32.xlu2 %v1421_v49, %s1440_s19  ;;  %v1031_v52 = vpop.permute.xlu0 %1030  ;;  %1141 = vmatpush.bf16.msra.mxu3 %v1301_v26 }
0x10c9   :  { %v1033_v33 = vmul.f32 %v1031_v52, %v1025_v32  ;;  %v1423_v54 = vpop.eup %1422  ;;  %v1302_v52 = vld [vmem:[%s1805_s8] sm:$0xff] }
0x10ca   :  { %v954_v55 = vadd.f32 1.0, %v1423_v54  ;;  %1180 = vmatpush.bf16.msra.mxu0 %v1302_v52 }
0x10cc   :  { %1424 = vrcp.f32 %v954_v55  ;;  %v966_v38 = vand.u32 2147483648, %v954_v55  ;;  %vm960_vm7 = vweird.f32 %v954_v55  ;;  %v964_v61 = vand.u32 2147483647, %v954_v55  ;;  %1142 = vmatpush.bf16.msra.mxu3 %v1300_v27 }
0x10ce   :  { %v967_v63 = vor.u32 1.1754944e-38, %v966_v38  ;;  %vm965_vm8 = vcmp.eq.f32.partialorder %v964_v61, 8.507059e+37 }
0x10d0   :  { %1035 = vrot.lane.b32.xlu2 %v1033_v33, %s1441_s1 }
0x10d2   :  { %v1425_v56 = vpop.eup %1424 }
0x10d3   :  { %v956_v57 = vmul.f32 %v1425_v56, %v954_v55  ;;  %vm961_vm4 = vweird.f32 %v1425_v56 }
0x10d4   :  { %vm962_vm0 = vmor %vm960_vm7, %vm961_vm4 }
0x10d5   :  { %v957_v58 = vsub.f32 1.0, %v956_v57  ;;  %v1309_v57 = vld [vmem:[%s1806_s9] ss:$0 sm:$0xff] }
0x10d7   :  { %v958_v59 = vmul.f32 %v1425_v56, %v957_v58 }
0x10d9   :  { %v959_v60 = vadd.f32 %v1425_v56, %v958_v59 }
0x10db   :  { %v963_v62 = vsel %vm962_vm0, %v1425_v56, %v959_v60 }
0x10dc   :  { %v968_v1 = vsel %vm965_vm8, %v967_v63, %v963_v62 }
0x10dd   :  { %v971_v9 = vmul.f32 %v968_v1, %v1740_v15 }
0x1122   :  { %v974_v0 = vpop.permute.xlu2 %973 }
0x1123   :  { %v976_v3 = vmul.f32 %v974_v0, %v968_v1 }
0x1125   :  { %978 = vrot.lane.b32.xlu1 %v976_v3, %s1441_s1 }
0x112a   :  { %v1036_v5 = vpop.permute.xlu2 %1035 }
0x112b   :  { %v1038_v6 = vadd.f32 %v1036_v5, %v1028_v4 }
0x112d   :  { %1426 = vtanh.f32 %v1038_v6 }
0x1133   :  { %v1427_v7 = vpop.eup %1426 }
0x1134   :  { %1041 = vrot.lane.b32.xlu1 %v1427_v7, %s1440_s19 }
0x1197   :  { %v979_v10 = vpop.permute.xlu1 %978 }
0x1198   :  { %v981_v11 = vadd.f32 %v979_v10, %v971_v9 }
0x119a   :  { %1428 = vtanh.f32 %v981_v11 }
0x11a0   :  { %v1429_v12 = vpop.eup %1428 }
0x11a1   :  { %984 = vrot.lane.b32.xlu0 %v1429_v12, %s1440_s19 }
0x11a6   :  { %v1042_v13 = vpop.permute.xlu1 %1041 }
0x11a7   :  { %v1044_v14 = vmul.f32 %v1042_v13, %v1025_v32  ;;  %v1308_v32 = vld [vmem:[%s1804_s7] ss:$0 sm:$0xff] }
0x11a9   :  { %1046 = vrot.lane.b32.xlu2 %v1044_v14, %s1441_s1 }
0x1203   :  { %v1047_v17 = vpop.permute.xlu2 %1046 }
0x1213   :  { %v985_v16 = vpop.permute.xlu0 %984 }
0x1214   :  { %v987_v8 = vmul.f32 %v985_v16, %v968_v1 }
0x1216   :  { %1050 = vrot.lane.b32.xlu0 %v987_v8, %s1440_s19 }
0x1288   :  { %v1051_v19 = vpop.permute.xlu0 %1050 }
0x1289   :  { %v1053_v28 = vsel %vm175_vm5, %v1047_v17, %v1051_v19 }
0x128a   :  { %v1054_v29 = vpack.c.bf16 %v1053_v28, %v1053_v28 }
0x128c   :  { %1269 = vmatmul.msk.bf16.vlgmr.msra.gmra.mxu1 %vm202_vm6, %v1054_v29 }
0x1309   :  { %v1067_v15 = vpop.f32.mrf.mxu1 }
0x130a   :  { %v1068_v21 = vadd.f32 %v1755_v41, %v1067_v15 }
0x130c   :  { %1430 = vtanh.f32 %v1068_v21  ;;  %v1270_v22 = vmul.f32 -1.442695, %v1068_v21 }
0x130e   :  { %1432 = vpow2.f32 %v1270_v22 }
0x1311   :  { %v1069_v35 = vpop.f32.mrf.mxu1 }
0x1312   :  { %v1431_v20 = vpop.eup %1430 }
0x1313   :  { %1093 = vrot.lane.b32.xlu1 %v1431_v20, %s1440_s19 }
0x1314   :  { %v1433_v23 = vpop.eup %1432 }
0x1315   :  { %v1074_v37 = vadd.f32 1.0, %v1433_v23 }
0x1317   :  { %1434 = vrcp.f32 %v1074_v37  ;;  %v1086_v40 = vand.u32 2147483648, %v1074_v37  ;;  %vm1080_vm6 = vweird.f32 %v1074_v37  ;;  %v1084_v34 = vand.u32 2147483647, %v1074_v37 }
0x1319   :  { %v1087_v43 = vor.u32 1.1754944e-38, %v1086_v40  ;;  %vm1085_vm11 = vcmp.eq.f32.partialorder %v1084_v34, 8.507059e+37 }
0x131d   :  { %v1435_v30 = vpop.eup %1434 }
0x131e   :  { %v1076_v39 = vmul.f32 %v1435_v30, %v1074_v37  ;;  %vm1081_vm9 = vweird.f32 %v1435_v30 }
0x131f   :  { %vm1082_vm10 = vmor %vm1080_vm6, %vm1081_vm9 }
0x1320   :  { %v1077_v24 = vsub.f32 1.0, %v1076_v39 }
0x1322   :  { %v1078_v18 = vmul.f32 %v1435_v30, %v1077_v24 }
0x1324   :  { %v1079_v36 = vadd.f32 %v1435_v30, %v1078_v18 }
0x1326   :  { %v1083_v42 = vsel %vm1082_vm10, %v1435_v30, %v1079_v36 }
0x1327   :  { %v1088_v45 = vsel %vm1085_vm11, %v1087_v43, %v1083_v42 }
0x1328   :  { %v1091_v47 = vmul.f32 %v1088_v45, %v981_v11 }
0x1385   :  { %v1094_v44 = vpop.permute.xlu1 %1093 }
0x1386   :  { %v1096_v46 = vmul.f32 %v1094_v44, %v1088_v45 }
0x1388   :  { %1098 = vrot.lane.b32.xlu2 %v1096_v46, %s1441_s1 }
0x13e2   :  { %v1099_v41 = vpop.permute.xlu2 %1098 }
0x13e3   :  { %v1101_v25 = vadd.f32 %v1099_v41, %v1091_v47 }
0x13e5   :  { %1436 = vtanh.f32 %v1101_v25 }
0x13eb   :  { %v1437_v48 = vpop.eup %1436 }
0x13ec   :  { %1104 = vrot.lane.b32.xlu0 %v1437_v48, %s1440_s19 }
0x145e   :  { %v1105_v49 = vpop.permute.xlu0 %1104 }
0x145f   :  { %v1107_v31 = vmul.f32 %v1105_v49, %v1088_v45 }
0x1461   :  { %v1108_v50 = vpack.c.bf16 %v1107_v31, %v1107_v31 }
0x1463   :  { %1118 = vrot.lane.b32.xlu1 %v1108_v50, %s1441_s1 }
0x14d5   :  { %v1119_v2 = vpop.permute.xlu1 %1118 }
0x14d6   :  { %1279 = vmatmul.msk.bf16.vlgmr.msra.gmra.mxu3 %vm175_vm5, %v1119_v2 }
0x1559   :  { %v1144_v33 = vpop.f32.mrf.mxu3 }
0x155a   :  { %v1145_v53 = vadd.f32 %v1308_v32, %v1144_v33 }
0x155c   :  { %v1148_v54 = vmax.f32 %v1145_v53, 0.0 }
0x155e   :  { %v1149_v55 = vpack.c.bf16 %v1148_v54, %v1148_v54 }
0x1560   :  { %1288 = vmatmul.msk.bf16.vlgmr.msra.gmra.mxu0 %vm175_vm5, %v1149_v55 }
0x1561   :  { %v1146_v56 = vpop.f32.mrf.mxu3 }
0x15dd   :  { %v1182_v58 = vpop.f32.mrf.mxu0 }
0x15de   :  { %v1183_v59 = vadd.f32 %v1309_v57, %v1182_v58 }
0x15e0   :  { %1187 = vst.msk [vmem:[%s1807_s10] sm:$0xff] %vm1186_vm12, %v1183_v59 }
0x15e5   :  { %v1184_v60 = vpop.f32.mrf.mxu0 }

</bundles_post_ra>
